<compile_context>
chip_gen: v7x
topology: tpu7x:2x2x1
jax: 0.10.0
libtpu: 0.0.40
codegen_flags: <defaults>
</compile_context>

<pallas_src>
import functools

import jax
import jax.numpy as jnp
from jax import lax
from jax.experimental import pallas as pl
from jax.experimental.pallas import tpu as pltpu


def aspect_kernel(tokens_ref, masks_ref,
                  wq_ref, bq_ref, wk_ref, bk_ref,
                  wl_ref, bl_ref, w1_ref, b1_ref, w2_ref, b2_ref,
                  logits_ref, pooled_ref,
                  *, num_heads, num_layers):
    x = tokens_ref[...]                      # (Bt, L, D) f32 embedded tokens
    masks = masks_ref[...]                   # (Bt, 2, L)
    fm = masks[:, 0, :]                      # (Bt, L)  1.0 for non-pad tokens
    am = masks[:, 1, :]                      # (Bt, L)  1.0 for aspect tokens
    Bt, L, D = x.shape

    # mask_ = fmask.unsqueeze(-1) @ fmask.unsqueeze(1); hoisted out of the head
    # path as an additive bias (0 where kept, -1e9 where masked).  Fully-padded
    # rows become uniform 1/L softmax rows, matching PyTorch's masked_fill
    # behaviour (harmless: the aspect max-pool discards those rows).
    mask2d = fm[:, :, None] * fm[:, None, :]                  # (Bt, L, L)
    neg_bias = jnp.where(mask2d == 0.0, -1e9, 0.0)

    # ---- multi-head self-attention adjacency --------------------------------
    # TODO(synk): OriMultiHeadAttention's 'combination' variants are not
    # available; standard scaled-dot-product attention weights are used.
    x_bf = x.reshape(Bt * L, D).astype(jnp.bfloat16)          # fold Bt into M
    q = jnp.dot(x_bf, wq_ref[...], preferred_element_type=jnp.float32) + bq_ref[...]
    k = jnp.dot(x_bf, wk_ref[...], preferred_element_type=jnp.float32) + bk_ref[...]
    h_dim = q.shape[-1]
    d_k = h_dim // num_heads
    scale = 1.0 / jnp.sqrt(jnp.float32(d_k))

    # Stack all heads into one batch dim g = h*Bt + b: ONE batched MXU matmul
    # and ONE batched softmax instead of num_heads tiny ones.
    qh = jnp.concatenate(
        [q[:, h * d_k:(h + 1) * d_k].reshape(Bt, L, d_k) for h in range(num_heads)],
        axis=0).astype(jnp.bfloat16)                          # (H*Bt, L, d_k)
    kh = jnp.concatenate(
        [k[:, h * d_k:(h + 1) * d_k].reshape(Bt, L, d_k) for h in range(num_heads)],
        axis=0).astype(jnp.bfloat16)
    s = jnp.einsum('gqd,gkd->gqk', qh, kh,
                   preferred_element_type=jnp.float32) * scale
    # Leading-dim reshape is layout-free: broadcast the mask bias across heads
    # instead of materializing a tiled copy.
    s = s.reshape(num_heads, Bt, L, L) + neg_bias[None]       # (H, Bt, L, L)
    s = s - jnp.max(s, axis=-1, keepdims=True)
    e = jnp.exp(s)
    attn = e / jnp.sum(e, axis=-1, keepdims=True)             # (H, Bt, L, L)

    # Head mean (adj_ag), then force the diagonal to 1:
    # adj_ag = adj_ag - diag(diag(adj_ag)) + I
    adj = jnp.sum(attn, axis=0) * (1.0 / num_heads)           # (Bt, L, L)
    rows = lax.broadcasted_iota(jnp.int32, (L, L), 0)
    cols = lax.broadcasted_iota(jnp.int32, (L, L), 1)
    adj = jnp.where((rows == cols)[None, :, :], 1.0, adj)

    # ---- attgcn layers -------------------------------------------------------
    # tokens_probe never changes in the PyTorch loop, so adj is the same for
    # every layer -> compute it once; denom reciprocal hoisted out of the loop.
    denom = jnp.sum(adj, axis=-1, keepdims=True) + 1.0        # (Bt, L, 1)
    inv_denom = 1.0 / denom
    adj_bf = adj.astype(jnp.bfloat16)

    tok = x
    # TODO(synk): switch to lax.fori_loop(..., unroll=True) with dynamic
    # wl_ref[l] indexing if num_layers grows beyond a handful.
    for l in range(num_layers):
        ax = jnp.einsum('bij,bjd->bid', adj_bf, tok.astype(jnp.bfloat16),
                        preferred_element_type=jnp.float32)   # Ax  (Bt, L, D)
        axw = jnp.einsum('bld,df->blf', ax.astype(jnp.bfloat16), wl_ref[l],
                         preferred_element_type=jnp.float32) + bl_ref[l]
        axw = axw * inv_denom
        tok = jnp.maximum(axw, 0.0)          # ReLU; gcn_drop is identity in eval

    # ---- aspect max-pool (pool == 'max') -------------------------------------
    not_aspect = (am[:, :, None] != 1.0)                      # (Bt, L, 1) True=NOT aspect
    pooled = jnp.max(jnp.where(not_aspect, -10000.0, tok), axis=1)   # (Bt, D)

    # ---- FFN head: Linear -> ReLU -> (Dropout=id) -> Linear ------------------
    h1 = jnp.maximum(
        jnp.dot(pooled.astype(jnp.bfloat16), w1_ref[...],
                preferred_element_type=jnp.float32) + b1_ref[...], 0.0)
    logits = jnp.dot(h1.astype(jnp.bfloat16), w2_ref[...],
                     preferred_element_type=jnp.float32) + b2_ref[...]

    pooled_ref[...] = pooled
    logits_ref[...] = logits                 # (Bt, C_pad): lane-dense store


def aspect_model_forward(tok_emb, fmask, amask, params, *,
                         num_heads, num_layers, batch_tile=8):
    B, L, D = tok_emb.shape
    HD = params["wq"].shape[1]
    assert HD % num_heads == 0
    C = params["w2"].shape[1]
    C_pad = 128 * pl.cdiv(C, 128)            # lane-dense logits slab

    Bt = min(batch_tile, B)
    nb = pl.cdiv(B, Bt)
    B_pad = nb * Bt
    if B_pad != B:                           # pad batch to a multiple of Bt
        pad = B_pad - B
        tok_emb = jnp.pad(tok_emb, ((0, pad), (0, 0), (0, 0)))
        fmask = jnp.pad(fmask, ((0, pad), (0, 0), (0, 0)))
        amask = jnp.pad(amask, ((0, pad), (0, 0), (0, 0)))
    # Fold both masks into one (B, 2, L) tensor -> single small DMA per step.
    masks = jnp.concatenate([fmask, amask], axis=1)

    f32, bf16 = jnp.float32, jnp.bfloat16
    # bf16 MXU operands (weights cast once here -> halves weight DMA bytes);
    # biases stay f32 since they add into f32 accumulators.
    wq = params["wq"].astype(bf16); bq = params["bq"].astype(f32)
    wk = params["wk"].astype(bf16); bk = params["bk"].astype(f32)
    wl = params["wl"].astype(bf16); bl = params["bl"].astype(f32)
    w1 = params["w1"].astype(bf16); b1 = params["b1"].astype(f32)
    w2 = jnp.pad(params["w2"], ((0, 0), (0, C_pad - C))).astype(bf16)
    b2 = jnp.pad(params["b2"], ((0, 0), (0, C_pad - C))).astype(f32)

    kernel = functools.partial(aspect_kernel,
                               num_heads=num_heads, num_layers=num_layers)

    def full(shape):
        return pl.BlockSpec(shape, lambda b, _n=len(shape): (0,) * _n)

    logits, pooled = pl.pallas_call(
        kernel,
        out_shape=(jax.ShapeDtypeStruct((B_pad, C_pad), jnp.float32),
                   jax.ShapeDtypeStruct((B_pad, D), jnp.float32)),
        grid_spec=pltpu.PrefetchScalarGridSpec(
            num_scalar_prefetch=0,
            grid=(nb,),
            in_specs=[
                pl.BlockSpec((Bt, L, D), lambda b: (b, 0, 0)),   # embedded tokens
                pl.BlockSpec((Bt, 2, L), lambda b: (b, 0, 0)),   # fmask + aspect mask
                full((D, HD)), full((1, HD)),                    # Wq, bq
                full((D, HD)), full((1, HD)),                    # Wk, bk
                full((num_layers, D, D)), full((num_layers, 1, D)),  # weight_list
                full((D, D)), full((1, D)),                      # ffn linear 1
                full((D, C_pad)), full((1, C_pad)),              # ffn linear 2 (padded)
            ],
            out_specs=[
                pl.BlockSpec((Bt, C_pad), lambda b: (b, 0)),     # preds_ (logits)
                pl.BlockSpec((Bt, D), lambda b: (b, 0)),         # preds  (pooled feats)
            ],
        ),
        compiler_params=pltpu.CompilerParams(
            dimension_semantics=("parallel",),
            # 32 MiB is a valid scoped-VMEM request on v5e/v6e (128 MiB) and
            # v7x (64 MiB per TC), and is ample for these tile sizes.
            vmem_limit_bytes=32 * 1024 * 1024),
    )(tok_emb, masks, wq, bq, wk, bk, wl, bl, w1, b1, w2, b2)

    # Slice off the class-dim lane padding and the batch padding.
    return logits[:B, :C], pooled[:B]


if __name__ == "__main__":
    # Small shapes: batch=16 (two batch-tiles of 8), seq=8, hidden=32,
    # heads=2, layers=2, classes=3.
    B, L, D = 16, 8, 32
    HEADS, LAYERS, C = 2, 2, 3
    H_DIM = 32          # args.h_dim (attention projection width = HEADS * d_k)
    VOCAB = 20
    PAD_ID = 1          # fmask = (tokens != 1) in the reference model

    key = jax.random.PRNGKey(0)
    keys = jax.random.split(key, 10)

    # Token ids; last two positions of each sequence are padding.
    token_ids = jax.random.randint(keys[0], (B, L), 0, VOCAB)
    token_ids = token_ids.at[:, -2:].set(PAD_ID)

    # Synthetic embedding (stands in for BERT / nn.Embedding).
    # TODO(synk): the BERT / BertWordPieceEncoder embedding stack itself is not
    # reproduced; a plain embedding-table gather supplies the token features.
    embed_table = jax.random.normal(keys[1], (VOCAB, D), jnp.float32) * 0.1
    tok_emb = embed_table[token_ids]                                  # (B, L, D)

    fmask = (token_ids != PAD_ID).astype(jnp.float32).reshape(B, 1, L)
    aspect_mask = jnp.zeros((B, L), jnp.float32).at[:, 1:3].set(1.0)  # aspect span
    amask = aspect_mask.reshape(B, 1, L)

    def init(k, shape, fan_in):
        return jax.random.normal(k, shape, jnp.float32) / jnp.sqrt(jnp.float32(fan_in))

    params = dict(
        wq=init(keys[2], (D, H_DIM), D), bq=jnp.zeros((1, H_DIM), jnp.float32),
        wk=init(keys[3], (D, H_DIM), D), bk=jnp.zeros((1, H_DIM), jnp.float32),
        wl=init(keys[4], (LAYERS, D, D), D),
        bl=init(keys[5], (LAYERS, 1, D), D),
        w1=init(keys[6], (D, D), D), b1=jnp.zeros((1, D), jnp.float32),
        w2=init(keys[7], (D, C), D), b2=jnp.zeros((1, C), jnp.float32),
    )

    preds_, preds = aspect_model_forward(tok_emb, fmask, amask, params,
                                         num_heads=HEADS, num_layers=LAYERS,
                                         batch_tile=8)
    jax.block_until_ready((preds_, preds))

    assert preds_.shape == (B, C) and preds.shape == (B, D)
    assert bool(jnp.all(jnp.isfinite(preds_))) and bool(jnp.all(jnp.isfinite(preds)))
    print("KERNEL_OK")
</pallas_src>

<mosaic_0001>
module attributes {stable_mosaic.version = 11 : i64} {
  func.func @aspect_kernel(%arg0: i32, %arg1: memref<8x8x32xf32, #tpu.memory_space<vmem>>, %arg2: memref<8x2x8xf32, #tpu.memory_space<vmem>>, %arg3: memref<32x32xbf16, #tpu.memory_space<vmem>>, %arg4: memref<1x32xf32, #tpu.memory_space<vmem>>, %arg5: memref<32x32xbf16, #tpu.memory_space<vmem>>, %arg6: memref<1x32xf32, #tpu.memory_space<vmem>>, %arg7: memref<2x32x32xbf16, #tpu.memory_space<vmem>>, %arg8: memref<2x1x32xf32, #tpu.memory_space<vmem>>, %arg9: memref<32x32xbf16, #tpu.memory_space<vmem>>, %arg10: memref<1x32xf32, #tpu.memory_space<vmem>>, %arg11: memref<32x128xbf16, #tpu.memory_space<vmem>>, %arg12: memref<1x128xf32, #tpu.memory_space<vmem>>, %arg13: memref<8x128xf32, #tpu.memory_space<vmem>>, %arg14: memref<8x32xf32, #tpu.memory_space<vmem>>) attributes {dimension_semantics = [#tpu.dimension_semantics<parallel>], iteration_bounds = array<i64: 2>, scalar_prefetch = 0 : i64, scratch_operands = 0 : i64, tpu.core_type = #tpu.core_type<tc>, window_params = [{transform_indices = @transform_0, window_bounds = array<i64: 8, 8, 32>}, {transform_indices = @transform_1, window_bounds = array<i64: 8, 2, 8>}, {pipeline_mode = #tpu.pipeline_mode<synchronous>, transform_indices = @transform_2, window_bounds = array<i64: 32, 32>}, {pipeline_mode = #tpu.pipeline_mode<synchronous>, transform_indices = @transform_3, window_bounds = array<i64: 1, 32>}, {pipeline_mode = #tpu.pipeline_mode<synchronous>, transform_indices = @transform_4, window_bounds = array<i64: 32, 32>}, {pipeline_mode = #tpu.pipeline_mode<synchronous>, transform_indices = @transform_5, window_bounds = array<i64: 1, 32>}, {pipeline_mode = #tpu.pipeline_mode<synchronous>, transform_indices = @transform_6, window_bounds = array<i64: 2, 32, 32>}, {pipeline_mode = #tpu.pipeline_mode<synchronous>, transform_indices = @transform_7, window_bounds = array<i64: 2, 1, 32>}, {pipeline_mode = #tpu.pipeline_mode<synchronous>, transform_indices = @transform_8, window_bounds = array<i64: 32, 32>}, {pipeline_mode = #tpu.pipeline_mode<synchronous>, transform_indices = @transform_9, window_bounds = array<i64: 1, 32>}, {pipeline_mode = #tpu.pipeline_mode<synchronous>, transform_indices = @transform_10, window_bounds = array<i64: 32, 128>}, {pipeline_mode = #tpu.pipeline_mode<synchronous>, transform_indices = @transform_11, window_bounds = array<i64: 1, 128>}, {transform_indices = @transform_12, window_bounds = array<i64: 8, 128>}, {transform_indices = @transform_13, window_bounds = array<i64: 8, 32>}]} {
    %c0 = arith.constant 0 : index
    %c0_0 = arith.constant 0 : index
    %c0_1 = arith.constant 0 : index
    %0 = vector.load %arg1[%c0, %c0_0, %c0_1] : memref<8x8x32xf32, #tpu.memory_space<vmem>>, vector<8x8x32xf32>
    %c0_2 = arith.constant 0 : index
    %c0_3 = arith.constant 0 : index
    %c0_4 = arith.constant 0 : index
    %1 = vector.load %arg2[%c0_2, %c0_3, %c0_4] : memref<8x2x8xf32, #tpu.memory_space<vmem>>, vector<8x2x8xf32>
    %2 = vector.extract_strided_slice %1 {offsets = [0, 0, 0], sizes = [8, 1, 8], strides = [1, 1, 1]} : vector<8x2x8xf32> to vector<8x1x8xf32>
    %3 = vector.shape_cast %2 : vector<8x1x8xf32> to vector<8x8xf32>
    %4 = vector.extract_strided_slice %1 {offsets = [0, 1, 0], sizes = [8, 1, 8], strides = [1, 1, 1]} : vector<8x2x8xf32> to vector<8x1x8xf32>
    %5 = vector.shape_cast %4 : vector<8x1x8xf32> to vector<8x8xf32>
    %6 = vector.shape_cast %3 : vector<8x8xf32> to vector<8x8x1xf32>
    %7 = vector.shape_cast %3 : vector<8x8xf32> to vector<8x1x8xf32>
    %8 = vector.broadcast %6 : vector<8x8x1xf32> to vector<8x8x8xf32>
    %9 = vector.broadcast %7 : vector<8x1x8xf32> to vector<8x8x8xf32>
    %10 = arith.mulf %8, %9 : vector<8x8x8xf32>
    %cst = arith.constant 0.000000e+00 : f32
    %11 = vector.broadcast %cst : f32 to vector<8x8x8xf32>
    %12 = arith.cmpf oeq, %10, %11 : vector<8x8x8xf32>
    %cst_5 = arith.constant -1.000000e+09 : f32
    %cst_6 = arith.constant 0.000000e+00 : f32
    %13 = vector.broadcast %cst_5 : f32 to vector<8x8x8xf32>
    %14 = vector.broadcast %cst_6 : f32 to vector<8x8x8xf32>
    %15 = arith.select %12, %13, %14 : vector<8x8x8xi1>, vector<8x8x8xf32>
    %16 = vector.shape_cast %0 : vector<8x8x32xf32> to vector<64x32xf32>
    %17 = arith.truncf %16 : vector<64x32xf32> to vector<64x32xbf16>
    %c0_7 = arith.constant 0 : index
    %c0_8 = arith.constant 0 : index
    %18 = vector.load %arg3[%c0_7, %c0_8] : memref<32x32xbf16, #tpu.memory_space<vmem>>, vector<32x32xbf16>
    %cst_9 = arith.constant dense<0.000000e+00> : vector<64x32xf32>
    %19 = tpu.matmul %17, %18, %cst_9 {dimension_numbers = #tpu.dot_dimension_numbers<[1], [0], [0], [1], [0, 0, 1, 1], [], []>} : vector<64x32xbf16>, vector<32x32xbf16>, vector<64x32xf32> -> vector<64x32xf32>
    %c0_10 = arith.constant 0 : index
    %c0_11 = arith.constant 0 : index
    %20 = vector.load %arg4[%c0_10, %c0_11] : memref<1x32xf32, #tpu.memory_space<vmem>>, vector<1x32xf32>
    %21 = vector.broadcast %20 : vector<1x32xf32> to vector<64x32xf32>
    %22 = arith.addf %19, %21 : vector<64x32xf32>
    %c0_12 = arith.constant 0 : index
    %c0_13 = arith.constant 0 : index
    %23 = vector.load %arg5[%c0_12, %c0_13] : memref<32x32xbf16, #tpu.memory_space<vmem>>, vector<32x32xbf16>
    %cst_14 = arith.constant dense<0.000000e+00> : vector<64x32xf32>
    %24 = tpu.matmul %17, %23, %cst_14 {dimension_numbers = #tpu.dot_dimension_numbers<[1], [0], [0], [1], [0, 0, 1, 1], [], []>} : vector<64x32xbf16>, vector<32x32xbf16>, vector<64x32xf32> -> vector<64x32xf32>
    %c0_15 = arith.constant 0 : index
    %c0_16 = arith.constant 0 : index
    %25 = vector.load %arg6[%c0_15, %c0_16] : memref<1x32xf32, #tpu.memory_space<vmem>>, vector<1x32xf32>
    %26 = vector.broadcast %25 : vector<1x32xf32> to vector<64x32xf32>
    %27 = arith.addf %24, %26 : vector<64x32xf32>
    %cst_17 = arith.constant 1.600000e+01 : f32
    %28 = math.sqrt %cst_17 : f32
    %cst_18 = arith.constant 1.000000e+00 : f32
    %29 = arith.divf %cst_18, %28 : f32
    %30 = vector.extract_strided_slice %22 {offsets = [0, 0], sizes = [64, 16], strides = [1, 1]} : vector<64x32xf32> to vector<64x16xf32>
    %31 = vector.shape_cast %30 : vector<64x16xf32> to vector<8x8x16xf32>
    %32 = vector.extract_strided_slice %22 {offsets = [0, 16], sizes = [64, 16], strides = [1, 1]} : vector<64x32xf32> to vector<64x16xf32>
    %33 = vector.shape_cast %32 : vector<64x16xf32> to vector<8x8x16xf32>
    %34 = tpu.concatenate %31, %33 in 0 : vector<8x8x16xf32>, vector<8x8x16xf32> -> vector<16x8x16xf32>
    %35 = arith.truncf %34 : vector<16x8x16xf32> to vector<16x8x16xbf16>
    %36 = vector.extract_strided_slice %27 {offsets = [0, 0], sizes = [64, 16], strides = [1, 1]} : vector<64x32xf32> to vector<64x16xf32>
    %37 = vector.shape_cast %36 : vector<64x16xf32> to vector<8x8x16xf32>
    %38 = vector.extract_strided_slice %27 {offsets = [0, 16], sizes = [64, 16], strides = [1, 1]} : vector<64x32xf32> to vector<64x16xf32>
    %39 = vector.shape_cast %38 : vector<64x16xf32> to vector<8x8x16xf32>
    %40 = tpu.concatenate %37, %39 in 0 : vector<8x8x16xf32>, vector<8x8x16xf32> -> vector<16x8x16xf32>
    %41 = arith.truncf %40 : vector<16x8x16xf32> to vector<16x8x16xbf16>
    "tpu.trace_start"() <{level = 10 : i32, message = "gqd,gkd->gqk"}> : () -> ()
    %cst_19 = arith.constant dense<0.000000e+00> : vector<16x8x8xf32>
    %42 = tpu.matmul %35, %41, %cst_19 {dimension_numbers = #tpu.dot_dimension_numbers<[2], [2], [1], [1], [0, 0, 0, 1, 1, 1], [0], [0]>} : vector<16x8x16xbf16>, vector<16x8x16xbf16>, vector<16x8x8xf32> -> vector<16x8x8xf32>
    "tpu.trace_stop"() : () -> ()
    %43 = vector.broadcast %29 : f32 to vector<16x8x8xf32>
    %44 = arith.mulf %42, %43 : vector<16x8x8xf32>
    %45 = vector.shape_cast %44 : vector<16x8x8xf32> to vector<2x8x8x8xf32>
    %46 = vector.shape_cast %15 : vector<8x8x8xf32> to vector<1x8x8x8xf32>
    %47 = vector.broadcast %46 : vector<1x8x8x8xf32> to vector<2x8x8x8xf32>
    %48 = arith.addf %45, %47 : vector<2x8x8x8xf32>
    %cst_20 = arith.constant dense<0xFF800000> : vector<2x8x8xf32>
    %49 = vector.multi_reduction <maximumf>, %48, %cst_20 [3] : vector<2x8x8x8xf32> to vector<2x8x8xf32>
    %50 = vector.shape_cast %49 : vector<2x8x8xf32> to vector<2x8x8x1xf32>
    %51 = vector.broadcast %50 : vector<2x8x8x1xf32> to vector<2x8x8x8xf32>
    %52 = arith.subf %48, %51 : vector<2x8x8x8xf32>
    %53 = math.exp %52 : vector<2x8x8x8xf32>
    %cst_21 = arith.constant dense<0.000000e+00> : vector<2x8x8xf32>
    %54 = vector.multi_reduction <add>, %53, %cst_21 [3] : vector<2x8x8x8xf32> to vector<2x8x8xf32>
    %55 = vector.shape_cast %54 : vector<2x8x8xf32> to vector<2x8x8x1xf32>
    %56 = vector.broadcast %55 : vector<2x8x8x1xf32> to vector<2x8x8x8xf32>
    %57 = arith.divf %53, %56 : vector<2x8x8x8xf32>
    %cst_22 = arith.constant dense<0.000000e+00> : vector<8x8x8xf32>
    %58 = vector.multi_reduction <add>, %57, %cst_22 [0] : vector<2x8x8x8xf32> to vector<8x8x8xf32>
    %cst_23 = arith.constant 5.000000e-01 : f32
    %59 = vector.broadcast %cst_23 : f32 to vector<8x8x8xf32>
    %60 = arith.mulf %58, %59 : vector<8x8x8xf32>
    %61 = tpu.iota {dimensions = array<i32: 0>} : vector<8x8xi32>
    %62 = tpu.iota {dimensions = array<i32: 1>} : vector<8x8xi32>
    %63 = arith.cmpi eq, %61, %62 : vector<8x8xi32>
    %64 = vector.shape_cast %63 : vector<8x8xi1> to vector<1x8x8xi1>
    %cst_24 = arith.constant 1.000000e+00 : f32
    %65 = vector.shape_cast %64 : vector<1x8x8xi1> to vector<1x8x8xi1>
    %66 = vector.broadcast %65 : vector<1x8x8xi1> to vector<8x8x8xi1>
    %67 = vector.broadcast %cst_24 : f32 to vector<8x8x8xf32>
    %68 = arith.select %66, %67, %60 : vector<8x8x8xi1>, vector<8x8x8xf32>
    %cst_25 = arith.constant dense<0.000000e+00> : vector<8x8xf32>
    %69 = vector.multi_reduction <add>, %68, %cst_25 [2] : vector<8x8x8xf32> to vector<8x8xf32>
    %70 = vector.shape_cast %69 : vector<8x8xf32> to vector<8x8x1xf32>
    %cst_26 = arith.constant 1.000000e+00 : f32
    %71 = vector.broadcast %cst_26 : f32 to vector<8x8x1xf32>
    %72 = arith.addf %70, %71 : vector<8x8x1xf32>
    %cst_27 = arith.constant 1.000000e+00 : f32
    %73 = vector.broadcast %cst_27 : f32 to vector<8x8x1xf32>
    %74 = arith.divf %73, %72 : vector<8x8x1xf32>
    %75 = arith.truncf %68 : vector<8x8x8xf32> to vector<8x8x8xbf16>
    %76 = arith.truncf %0 : vector<8x8x32xf32> to vector<8x8x32xbf16>
    "tpu.trace_start"() <{level = 10 : i32, message = "bij,bjd->bid"}> : () -> ()
    %cst_28 = arith.constant dense<0.000000e+00> : vector<8x8x32xf32>
    %77 = tpu.matmul %75, %76, %cst_28 {dimension_numbers = #tpu.dot_dimension_numbers<[2], [1], [1], [2], [0, 0, 0, 1, 1, 2], [0], [0]>} : vector<8x8x8xbf16>, vector<8x8x32xbf16>, vector<8x8x32xf32> -> vector<8x8x32xf32>
    "tpu.trace_stop"() : () -> ()
    %78 = arith.truncf %77 : vector<8x8x32xf32> to vector<8x8x32xbf16>
    %c0_29 = arith.constant 0 : index
    %c0_30 = arith.constant 0 : index
    %c0_31 = arith.constant 0 : index
    %79 = vector.load %arg7[%c0_29, %c0_30, %c0_31] : memref<2x32x32xbf16, #tpu.memory_space<vmem>>, vector<1x32x32xbf16>
    %80 = vector.shape_cast %79 : vector<1x32x32xbf16> to vector<32x32xbf16>
    "tpu.trace_start"() <{level = 10 : i32, message = "bld,df->blf"}> : () -> ()
    %cst_32 = arith.constant dense<0.000000e+00> : vector<8x8x32xf32>
    %81 = tpu.matmul %78, %80, %cst_32 {dimension_numbers = #tpu.dot_dimension_numbers<[2], [0], [0, 1], [1], [0, 0, 0, 1, 1, 1], [], []>} : vector<8x8x32xbf16>, vector<32x32xbf16>, vector<8x8x32xf32> -> vector<8x8x32xf32>
    "tpu.trace_stop"() : () -> ()
    %c0_33 = arith.constant 0 : index
    %c0_34 = arith.constant 0 : index
    %c0_35 = arith.constant 0 : index
    %82 = vector.load %arg8[%c0_33, %c0_34, %c0_35] : memref<2x1x32xf32, #tpu.memory_space<vmem>>, vector<1x1x32xf32>
    %83 = vector.shape_cast %82 : vector<1x1x32xf32> to vector<1x32xf32>
    %84 = vector.shape_cast %83 : vector<1x32xf32> to vector<1x1x32xf32>
    %85 = vector.broadcast %84 : vector<1x1x32xf32> to vector<8x8x32xf32>
    %86 = arith.addf %81, %85 : vector<8x8x32xf32>
    %87 = vector.broadcast %74 : vector<8x8x1xf32> to vector<8x8x32xf32>
    %88 = arith.mulf %86, %87 : vector<8x8x32xf32>
    %cst_36 = arith.constant 0.000000e+00 : f32
    %89 = vector.broadcast %cst_36 : f32 to vector<8x8x32xf32>
    %90 = arith.maximumf %88, %89 : vector<8x8x32xf32>
    %91 = arith.truncf %90 : vector<8x8x32xf32> to vector<8x8x32xbf16>
    "tpu.trace_start"() <{level = 10 : i32, message = "bij,bjd->bid"}> : () -> ()
    %cst_37 = arith.constant dense<0.000000e+00> : vector<8x8x32xf32>
    %92 = tpu.matmul %75, %91, %cst_37 {dimension_numbers = #tpu.dot_dimension_numbers<[2], [1], [1], [2], [0, 0, 0, 1, 1, 2], [0], [0]>} : vector<8x8x8xbf16>, vector<8x8x32xbf16>, vector<8x8x32xf32> -> vector<8x8x32xf32>
    "tpu.trace_stop"() : () -> ()
    %93 = arith.truncf %92 : vector<8x8x32xf32> to vector<8x8x32xbf16>
    %c1 = arith.constant 1 : index
    %c0_38 = arith.constant 0 : index
    %c0_39 = arith.constant 0 : index
    %94 = vector.load %arg7[%c1, %c0_38, %c0_39] : memref<2x32x32xbf16, #tpu.memory_space<vmem>>, vector<1x32x32xbf16>
    %95 = vector.shape_cast %94 : vector<1x32x32xbf16> to vector<32x32xbf16>
    "tpu.trace_start"() <{level = 10 : i32, message = "bld,df->blf"}> : () -> ()
    %cst_40 = arith.constant dense<0.000000e+00> : vector<8x8x32xf32>
    %96 = tpu.matmul %93, %95, %cst_40 {dimension_numbers = #tpu.dot_dimension_numbers<[2], [0], [0, 1], [1], [0, 0, 0, 1, 1, 1], [], []>} : vector<8x8x32xbf16>, vector<32x32xbf16>, vector<8x8x32xf32> -> vector<8x8x32xf32>
    "tpu.trace_stop"() : () -> ()
    %c1_41 = arith.constant 1 : index
    %c0_42 = arith.constant 0 : index
    %c0_43 = arith.constant 0 : index
    %97 = vector.load %arg8[%c1_41, %c0_42, %c0_43] : memref<2x1x32xf32, #tpu.memory_space<vmem>>, vector<1x1x32xf32>
    %98 = vector.shape_cast %97 : vector<1x1x32xf32> to vector<1x32xf32>
    %99 = vector.shape_cast %98 : vector<1x32xf32> to vector<1x1x32xf32>
    %100 = vector.broadcast %99 : vector<1x1x32xf32> to vector<8x8x32xf32>
    %101 = arith.addf %96, %100 : vector<8x8x32xf32>
    %102 = vector.broadcast %74 : vector<8x8x1xf32> to vector<8x8x32xf32>
    %103 = arith.mulf %101, %102 : vector<8x8x32xf32>
    %cst_44 = arith.constant 0.000000e+00 : f32
    %104 = vector.broadcast %cst_44 : f32 to vector<8x8x32xf32>
    %105 = arith.maximumf %103, %104 : vector<8x8x32xf32>
    %106 = vector.shape_cast %5 : vector<8x8xf32> to vector<8x8x1xf32>
    %cst_45 = arith.constant 1.000000e+00 : f32
    %107 = vector.broadcast %cst_45 : f32 to vector<8x8x1xf32>
    %108 = arith.cmpf one, %106, %107 : vector<8x8x1xf32>
    %cst_46 = arith.constant -1.000000e+04 : f32
    %109 = vector.shape_cast %108 : vector<8x8x1xi1> to vector<8x8x1xi1>
    %110 = vector.broadcast %109 : vector<8x8x1xi1> to vector<8x8x32xi1>
    %111 = vector.broadcast %cst_46 : f32 to vector<8x8x32xf32>
    %112 = arith.select %110, %111, %105 : vector<8x8x32xi1>, vector<8x8x32xf32>
    %cst_47 = arith.constant dense<0xFF800000> : vector<8x32xf32>
    %113 = vector.multi_reduction <maximumf>, %112, %cst_47 [1] : vector<8x8x32xf32> to vector<8x32xf32>
    %114 = arith.truncf %113 : vector<8x32xf32> to vector<8x32xbf16>
    %c0_48 = arith.constant 0 : index
    %c0_49 = arith.constant 0 : index
    %115 = vector.load %arg9[%c0_48, %c0_49] : memref<32x32xbf16, #tpu.memory_space<vmem>>, vector<32x32xbf16>
    %cst_50 = arith.constant dense<0.000000e+00> : vector<8x32xf32>
    %116 = tpu.matmul %114, %115, %cst_50 {dimension_numbers = #tpu.dot_dimension_numbers<[1], [0], [0], [1], [0, 0, 1, 1], [], []>} : vector<8x32xbf16>, vector<32x32xbf16>, vector<8x32xf32> -> vector<8x32xf32>
    %c0_51 = arith.constant 0 : index
    %c0_52 = arith.constant 0 : index
    %117 = vector.load %arg10[%c0_51, %c0_52] : memref<1x32xf32, #tpu.memory_space<vmem>>, vector<1x32xf32>
    %118 = vector.broadcast %117 : vector<1x32xf32> to vector<8x32xf32>
    %119 = arith.addf %116, %118 : vector<8x32xf32>
    %cst_53 = arith.constant 0.000000e+00 : f32
    %120 = vector.broadcast %cst_53 : f32 to vector<8x32xf32>
    %121 = arith.maximumf %119, %120 : vector<8x32xf32>
    %122 = arith.truncf %121 : vector<8x32xf32> to vector<8x32xbf16>
    %c0_54 = arith.constant 0 : index
    %c0_55 = arith.constant 0 : index
    %123 = vector.load %arg11[%c0_54, %c0_55] : memref<32x128xbf16, #tpu.memory_space<vmem>>, vector<32x128xbf16>
    %cst_56 = arith.constant dense<0.000000e+00> : vector<8x128xf32>
    %124 = tpu.matmul %122, %123, %cst_56 {dimension_numbers = #tpu.dot_dimension_numbers<[1], [0], [0], [1], [0, 0, 1, 1], [], []>} : vector<8x32xbf16>, vector<32x128xbf16>, vector<8x128xf32> -> vector<8x128xf32>
    %c0_57 = arith.constant 0 : index
    %c0_58 = arith.constant 0 : index
    %125 = vector.load %arg12[%c0_57, %c0_58] : memref<1x128xf32, #tpu.memory_space<vmem>>, vector<1x128xf32>
    %126 = vector.broadcast %125 : vector<1x128xf32> to vector<8x128xf32>
    %127 = arith.addf %124, %126 : vector<8x128xf32>
    %c0_59 = arith.constant 0 : index
    %c0_60 = arith.constant 0 : index
    %128 = vector.load %arg14[%c0_59, %c0_60] : memref<8x32xf32, #tpu.memory_space<vmem>>, vector<8x32xf32>
    tpu.vector_store %arg14[%c0_59, %c0_60], %113 {strides = array<i32>} : memref<8x32xf32, #tpu.memory_space<vmem>>, vector<8x32xf32>,
    %c0_61 = arith.constant 0 : index
    %c0_62 = arith.constant 0 : index
    %129 = vector.load %arg13[%c0_61, %c0_62] : memref<8x128xf32, #tpu.memory_space<vmem>>, vector<8x128xf32>
    tpu.vector_store %arg13[%c0_61, %c0_62], %127 {strides = array<i32>} : memref<8x128xf32, #tpu.memory_space<vmem>>, vector<8x128xf32>,
    return
  }
  func.func @transform_0(%arg0: i32) -> (i32, i32, i32) {
    %c0_i32 = arith.constant 0 : i32
    %c0_i32_0 = arith.constant 0 : i32
    %c0_i32_1 = arith.constant 0 : i32
    return %arg0, %c0_i32, %c0_i32_0 : i32, i32, i32
  }
  func.func @transform_1(%arg0: i32) -> (i32, i32, i32) {
    %c0_i32 = arith.constant 0 : i32
    %c0_i32_0 = arith.constant 0 : i32
    %c0_i32_1 = arith.constant 0 : i32
    return %arg0, %c0_i32, %c0_i32_0 : i32, i32, i32
  }
  func.func @transform_2(%arg0: i32) -> (i32, i32) {
    %c0_i32 = arith.constant 0 : i32
    %c0_i32_0 = arith.constant 0 : i32
    %c0_i32_1 = arith.constant 0 : i32
    return %c0_i32, %c0_i32_0 : i32, i32
  }
  func.func @transform_3(%arg0: i32) -> (i32, i32) {
    %c0_i32 = arith.constant 0 : i32
    %c0_i32_0 = arith.constant 0 : i32
    %c0_i32_1 = arith.constant 0 : i32
    return %c0_i32, %c0_i32_0 : i32, i32
  }
  func.func @transform_4(%arg0: i32) -> (i32, i32) {
    %c0_i32 = arith.constant 0 : i32
    %c0_i32_0 = arith.constant 0 : i32
    %c0_i32_1 = arith.constant 0 : i32
    return %c0_i32, %c0_i32_0 : i32, i32
  }
  func.func @transform_5(%arg0: i32) -> (i32, i32) {
    %c0_i32 = arith.constant 0 : i32
    %c0_i32_0 = arith.constant 0 : i32
    %c0_i32_1 = arith.constant 0 : i32
    return %c0_i32, %c0_i32_0 : i32, i32
  }
  func.func @transform_6(%arg0: i32) -> (i32, i32, i32) {
    %c0_i32 = arith.constant 0 : i32
    %c0_i32_0 = arith.constant 0 : i32
    %c0_i32_1 = arith.constant 0 : i32
    %c0_i32_2 = arith.constant 0 : i32
    return %c0_i32, %c0_i32_0, %c0_i32_1 : i32, i32, i32
  }
  func.func @transform_7(%arg0: i32) -> (i32, i32, i32) {
    %c0_i32 = arith.constant 0 : i32
    %c0_i32_0 = arith.constant 0 : i32
    %c0_i32_1 = arith.constant 0 : i32
    %c0_i32_2 = arith.constant 0 : i32
    return %c0_i32, %c0_i32_0, %c0_i32_1 : i32, i32, i32
  }
  func.func @transform_8(%arg0: i32) -> (i32, i32) {
    %c0_i32 = arith.constant 0 : i32
    %c0_i32_0 = arith.constant 0 : i32
    %c0_i32_1 = arith.constant 0 : i32
    return %c0_i32, %c0_i32_0 : i32, i32
  }
  func.func @transform_9(%arg0: i32) -> (i32, i32) {
    %c0_i32 = arith.constant 0 : i32
    %c0_i32_0 = arith.constant 0 : i32
    %c0_i32_1 = arith.constant 0 : i32
    return %c0_i32, %c0_i32_0 : i32, i32
  }
  func.func @transform_10(%arg0: i32) -> (i32, i32) {
    %c0_i32 = arith.constant 0 : i32
    %c0_i32_0 = arith.constant 0 : i32
    %c0_i32_1 = arith.constant 0 : i32
    return %c0_i32, %c0_i32_0 : i32, i32
  }
  func.func @transform_11(%arg0: i32) -> (i32, i32) {
    %c0_i32 = arith.constant 0 : i32
    %c0_i32_0 = arith.constant 0 : i32
    %c0_i32_1 = arith.constant 0 : i32
    return %c0_i32, %c0_i32_0 : i32, i32
  }
  func.func @transform_12(%arg0: i32) -> (i32, i32) {
    %c0_i32 = arith.constant 0 : i32
    %c0_i32_0 = arith.constant 0 : i32
    return %arg0, %c0_i32 : i32, i32
  }
  func.func @transform_13(%arg0: i32) -> (i32, i32) {
    %c0_i32 = arith.constant 0 : i32
    %c0_i32_0 = arith.constant 0 : i32
    return %arg0, %c0_i32 : i32, i32
  }
}

</mosaic_0001>

<bundles_post_ra>
// kernel: tpu_custom_call.1
= control target key start
LH: loop header
LB: loop body
LE: loop exit
PB: predicated region body
PF: predicated region fallthrough
CT: control target
= control target key end

     0   :  { %s5583_s0 = inlined_call_operand.hbm [shape: f32[16,8,32], index: 0, kind: input, shape index: {}]   ;;  %s5584_s1 = inlined_call_operand.vmem [shape: f32[16,2,8], index: 1, kind: input, shape index: {}]   ;;  %s5585_s2 = inlined_call_operand.vmem [shape: bf16[32,32], index: 2, kind: input, shape index: {}]   ;;  %s5586_s3 = inlined_call_operand.hbm [shape: f32[1,32], index: 3, kind: input, shape index: {}]   ;;  %s5587_s4 = inlined_call_operand.hbm [shape: bf16[32,32], index: 4, kind: input, shape index: {}]   ;;  %s5588_s5 = inlined_call_operand.hbm [shape: f32[1,32], index: 5, kind: input, shape index: {}]   ;;  %s5589_s6 = inlined_call_operand.vmem [shape: bf16[2,32,32], index: 6, kind: input, shape index: {}]   ;;  %s5590_s7 = inlined_call_operand.vmem [shape: f32[2,1,32], index: 7, kind: input, shape index: {}]   ;;  %s5591_s8 = inlined_call_operand.vmem [shape: bf16[32,32], index: 8, kind: input, shape index: {}]   ;;  %s5592_s9 = inlined_call_operand.hbm [shape: f32[1,32], index: 9, kind: input, shape index: {}]   ;;  %s5593_s10 = inlined_call_operand.vmem [shape: bf16[32,128], index: 10, kind: input, shape index: {}]   ;;  %s5594_s11 = inlined_call_operand.vmem [shape: f32[1,128], index: 11, kind: input, shape index: {}]   ;;  %s5595_s12 = inlined_call_operand.hbm [shape: f32[16,128], index: 12, kind: output, shape index: {0}]   ;;  %s5596_s13 = inlined_call_operand.hbm [shape: f32[16,32], index: 13, kind: output, shape index: {1}]  }
   0x1   :  { %5604 = sst [smem:[#allocation21_spill]] %s5583_s0 }
   0x2   :  { %5605 = sst [smem:[#allocation22_spill]] %s5586_s3 }
   0x3   :  { %5606 = sst [smem:[#allocation23_spill]] %s5588_s5 }
   0x4   :  { %5607 = sst [smem:[#allocation24_spill]] %s5594_s11 }
   0x5   :  { %5608 = sst [smem:[#allocation25_spill]] %s5595_s12 }
   0x6   :  { %5609 = sst [smem:[#allocation26_spill]] %s5596_s13 }
   0x7   :  { %19 = vsyncpa [#allocation3], 0 }
   0x8   :  { %21 = vsyncpa [#allocation3 + $0x1], 0 }
   0x9   :  { %22 = vsyncpa [#allocation6], 0 }
   0xa   :  { %23 = vsyncpa [#allocation9], 0 }
   0xb   :  { %24 = vsyncpa [#allocation4], 0 }
   0xc   :  { %26 = vsyncpa [#allocation4 + $0x1], 0 }
   0xd   :  { %27 = vsyncpa [#allocation13], 0 }
   0xe   :  { %29 = vsyncpa [#allocation13 + $0x1], 0  ;;  %s4565_s25 = smov 0   ;;  %s4567_s26 = smov 0  }
   0xf   :  { %s4569_s27 = smov 0   ;;  %s4571_s28 = smov 0  }
  0x10 LB: > { %5610 = sst [smem:[#allocation19_spill]] %s4467_s25  ;;  %s4586_s29 = sadd.s32 4294967295, %s4479_s28   ;;  %s4479_s28 = sphi %s4571_s28, %s5642_s28   ;;  %s4475_s27 = sphi %s4569_s27, %s5641_s27   ;;  %s4471_s26 = sphi %s4567_s26, %s5640_s26   ;;  %s4467_s25 = sphi %s4565_s25, %s5639_s25  }
  0x11   : > { %s3518_s30 = sadd.s32 4294967294, %s4479_s28   ;;  %p55_p0 = scmp.ne.s32.totalorder %s4471_s26, %s4467_s25 }
  0x12   : > { %p5600_p1 = scmp.eq.s32.totalorder %s4586_s29, 0  ;;  %p321_p3 = scmp.eq.s32.totalorder %s3518_s30, 1 }
  0x13   : > { %p3519_p5 = scmp.ge.s32.totalorder %s4479_s28, 1  ;;  %p354_p7 = scmp.lt.s32.totalorder %s4479_s28, 3 }
  0x14   : > { %p4595_p4 = por %p5600_p1, %p55_p0  ;;  %p4600_p6 = por %p321_p3, %p55_p0 }
  0x15   : > { %p4605_p8 = pnand %p3519_p5, %p354_p7  ;;  %s4481_s17 = smov [#allocation5]  }
  0x16   : > { %s5611_s14 = scalar_select %p4595_p4, 1, 0 }
  0x17   : > { %s5612_s15 = scalar_select %p4600_p6, 1, 0 }
  0x18   : > { %s5614_s16 = scalar_select %p4605_p8, 1, 0 }
  0x19   : > { %5613 = sst [smem:[#allocation20_spill]] %s5612_s15  ;;  %s370_s18 = sshll.u32 %s4481_s17, 4  ;;  %s371_s18 = int_to_ptr.vmem [resolvable:$true] %s370_s18 }
  0x1a   : > { %p4006_p10 = pneg %p4605_p8  ;;  %s4482_s19 = smov [#allocation8]  }
  0x1b   : > { %s394_s20 = sshll.u32 %s4482_s19, 4  ;;  %s4483_s22 = smov [#allocation7]   ;;  %s4618_s20 = int_to_ptr.vmem [resolvable:$true] %s394_s20 }
  0x1c   : > { %p4614_p11 = pnand %p4006_p10, %p5600_p1  ;;  %s380_s23 = sshll.u32 %s4483_s22, 4  ;;  %s4620_s23 = int_to_ptr.vmem [resolvable:$true] %s380_s23 }
  0x1d   : > { %s5616_s3 = sld [smem:[#allocation22_spill]] }
  0x1e   : > { %p4630_p13 = pneg %p4614_p11 }
  0x23   : > { %s4231_s17 = scalar_lea.hbm %s5616_s3, 16 }
  0x24   : > { %p4232_p12 = scmp.ne.s32.totalorder %s5616_s3, %s4231_s17  ;;  %p4238_p5 = scmp.lt.u32.totalorder %s4231_s17, %s5616_s3 }
  0x26   : > { %p4234_p0 = pnand %p4630_p13, %p4232_p12 }
  0x28   : > { %p4235_p3 = pneg %p4234_p0 }
  0x2a   : > { %p4240_p7 = pnand %p4238_p5, %p4235_p3 }
  0x2c   : > { %4243 = shalt.err (!%p4240_p7)
}
  0x2d   : > { %s4244_s24 = scalar_lea.vmem %s371_s18, 16  ;;  %s4251_s25 = scalar_lea.vmem %s371_s18, 32 }
  0x2e   : > { %p4245_p10 = scmp.ne.s32.totalorder %s371_s18, %s4244_s24  ;;  %p4252_p2 = scmp.lt.s32.totalorder %s371_s18, %s371_s18 }
  0x2f   : > { %p4253_p6 = scmp.lt.s32.totalorder %s4251_s25, %s4244_s24 }
  0x30   : > { %p4247_p9 = pnand %p4245_p10, %p4630_p13 }
  0x31   : > { %p4254_p4 = por %p4253_p6, %p4252_p2 }
  0x32   : > { %p4248_p1 = pneg %p4247_p9 }
  0x34   : > { %p4255_p8 = pnand %p4254_p4, %p4248_p1 }
  0x36   : > { %4258 = shalt.err (!%p4255_p8)
}
  0x37   : > { %4009 = dma.hbm_to_vmem [thread:$0]  (!%p4614_p11), %s5616_s3, 16, %s371_s18, [#allocation6]  }
  0x38   : > { %s5618_s5 = sld [smem:[#allocation23_spill]] }
  0x3e   : > { %s4259_s22 = scalar_lea.hbm %s5618_s5, 16 }
  0x3f   : > { %p4260_p9 = scmp.ne.s32.totalorder %s5618_s5, %s4259_s22  ;;  %p4266_p1 = scmp.lt.u32.totalorder %s4259_s22, %s5618_s5 }
  0x41   : > { %p4262_p12 = pnand %p4260_p9, %p4630_p13 }
  0x43   : > { %p4263_p2 = pneg %p4262_p12 }
  0x45   : > { %p4268_p4 = pnand %p4266_p1, %p4263_p2 }
  0x47   : > { %4271 = shalt.err (!%p4268_p4)
}
  0x48   : > { %s4272_s18 = scalar_lea.vmem %s4618_s20, 16  ;;  %s4279_s11 = scalar_lea.vmem %s4618_s20, 32 }
  0x49   : > { %p4273_p6 = scmp.ne.s32.totalorder %s4618_s20, %s4272_s18  ;;  %p4280_p3 = scmp.lt.s32.totalorder %s4618_s20, %s4618_s20 }
  0x4a   : > { %p4281_p5 = scmp.lt.s32.totalorder %s4279_s11, %s4272_s18 }
  0x4b   : > { %p4275_p8 = pnand %p4273_p6, %p4630_p13 }
  0x4c   : > { %p4282_p7 = por %p4281_p5, %p4280_p3 }
  0x4d   : > { %p4276_p0 = pneg %p4275_p8 }
  0x4f   : > { %p4283_p10 = pnand %p4282_p7, %p4276_p0 }
  0x51   : > { %4286 = shalt.err (!%p4283_p10)
}
  0x52   : > { %4015 = dma.hbm_to_vmem [thread:$0]  (!%p4614_p11), %s5618_s5, 16, %s4618_s20, [#allocation9]  }
  0x53   : > { %s4287_s17 = scalar_lea.hbm %s5587_s4, 256 }
  0x54   : > { %p4288_p9 = scmp.ne.s32.totalorder %s5587_s4, %s4287_s17  ;;  %p4294_p1 = scmp.lt.u32.totalorder %s4287_s17, %s5587_s4 }
  0x56   : > { %p4290_p12 = pnand %p4288_p9, %p4630_p13 }
  0x58   : > { %p4291_p2 = pneg %p4290_p12 }
  0x5a   : > { %p4296_p4 = pnand %p4294_p1, %p4291_p2 }
  0x5c   : > { %4299 = shalt.err (!%p4296_p4)
}
  0x5d   : > { %s4300_s20 = scalar_lea.vmem %s4620_s23, 256  ;;  %p4308_p3 = scmp.lt.s32.totalorder %s4620_s23, %s4620_s23 }
  0x5e   : > { %p4301_p6 = scmp.ne.s32.totalorder %s4620_s23, %s4300_s20  ;;  %p4309_p5 = scmp.lt.s32.totalorder %s4300_s20, %s4300_s20 }
  0x60   : > { %p4303_p8 = pnand %p4301_p6, %p4630_p13  ;;  %p4310_p7 = por %p4309_p5, %p4308_p3 }
  0x62   : > { %p4304_p0 = pneg %p4303_p8 }
  0x64   : > { %p4311_p10 = pnand %p4310_p7, %p4304_p0 }
  0x66   : > { %4314 = shalt.err (!%p4311_p10)
}
  0x67   : > { %s4484_s11 = smov 64   ;;  %s4485_s13 = smov 4  }
  0x68   : > { %4012 = dma.hbm_to_vmem [thread:$0]  (!%p4614_p11), %s5587_s4, 256, %s4620_s23, [#allocation6], %s4484_s11, %s4484_s11, %s4485_s13  }
  0x69   : > { %s4486_s12 = smov [#allocation10]   ;;  %s4315_s25 = scalar_lea.hbm %s5592_s9, 16 }
  0x6a   : > { %s414_s17 = sshll.u32 %s4486_s12, 4  ;;  %p4316_p9 = scmp.ne.s32.totalorder %s5592_s9, %s4315_s25  ;;  %s415_s17 = int_to_ptr.vmem [resolvable:$true] %s414_s17 }
  0x6b   : > { %p4322_p1 = scmp.lt.u32.totalorder %s4315_s25, %s5592_s9 }
  0x6c   : > { %p4318_p12 = pnand %p4316_p9, %p4630_p13 }
  0x6e   : > { %p4319_p2 = pneg %p4318_p12 }
  0x70   : > { %p4324_p4 = pnand %p4322_p1, %p4319_p2 }
  0x72   : > { %4327 = shalt.err (!%p4324_p4)
}
  0x73   : > { %s4328_s23 = scalar_lea.vmem %s415_s17, 16  ;;  %s4335_s11 = scalar_lea.vmem %s415_s17, 32 }
  0x74   : > { %p4329_p6 = scmp.ne.s32.totalorder %s415_s17, %s4328_s23  ;;  %p4336_p3 = scmp.lt.s32.totalorder %s415_s17, %s415_s17 }
  0x75   : > { %p4337_p5 = scmp.lt.s32.totalorder %s4335_s11, %s4328_s23 }
  0x76   : > { %p4331_p8 = pnand %p4329_p6, %p4630_p13 }
  0x77   : > { %p4338_p7 = por %p4337_p5, %p4336_p3 }
  0x78   : > { %p4332_p0 = pneg %p4331_p8 }
  0x7a   : > { %p4339_p10 = pnand %p4338_p7, %p4332_p0 }
  0x7c   : > { %4342 = shalt.err (!%p4339_p10)
}
  0x7d   : > { %4018 = dma.hbm_to_vmem [thread:$0]  (!%p4614_p11), %s5592_s9, 16, %s415_s17, [#allocation9]  }
  0x7e   : > { %s4712_s3 = sadd.s32 1, %s4479_s28   ;;  %s42_s5 = sadd.s32 1, %s4475_s27 }
  0x7f   : > { %s39_s21 = ssub.s32 %s4479_s28, %s4712_s3  ;;  %p49_p13 = scmp.ne.s32.totalorder %s4475_s27, %s4471_s26 }
  0x80   : > { %p40_p9 = scmp.eq.s32.totalorder %s39_s21, 0  ;;  %p50_p12 = scmp.eq.s32.totalorder %s4479_s28, 0 }
  0x81   : > { %p5619_p2 = scmp.eq.s32.totalorder %s4586_s29, 1  ;;  %p4034_p4 = scmp.lt.s32.totalorder %s4479_s28, 2 }
  0x82   : > { %s4728_s30 = scalar_select %p40_p9, %s4475_s27, %s42_s5  }
  0x83   : > { %p4722_p1 = por %p5619_p2, %p49_p13  ;;  %p51_p6 = por %p50_p12, %p49_p13 }
  0x84   : > { %s431_s12 = sand.u32 1, %s4475_s27   ;;  %s3625_s17 = sshll.u32 %s4479_s28, 10 }
  0x85   : > { %s3525_s22 = sshll.u32 %s431_s12, 6  ;;  %s5621_s0 = sld [smem:[#allocation21_spill]] }
  0x86   : > { %s435_s20 = scalar_lea.vmem [#allocation2], %s3525_s22  ;;  %p4739_p11 = pnand %p4034_p4, %p51_p6 }
  0x87   : > { %s442_s23 = sshll.u32 %s435_s20, 4  ;;  %s4743_s13 = scalar_lea.sflag [#allocation3], %s431_s12  ;;  %s4737_s23 = int_to_ptr.vmem [resolvable:$true] %s442_s23 }
  0x88   : > { %p4345_p0 = pneg %p4739_p11 }
  0x8b   : > { %s4735_s18 = scalar_lea.hbm %s5621_s0, %s3625_s17  ;;  %s4348_s22 = scalar_lea.hbm %s5621_s0, 2048 }
  0x8c   : > { %s4343_s15 = scalar_lea.hbm %s4735_s18, 1024  ;;  %p4349_p7 = scmp.lt.u32.totalorder %s4735_s18, %s5621_s0 }
  0x8d   : > { %p4344_p8 = scmp.ne.s32.totalorder %s4735_s18, %s4343_s15  ;;  %p4350_p10 = scmp.lt.u32.totalorder %s4348_s22, %s4343_s15 }
  0x8e   : > { %p4352_p9 = scmp.lt.u32.totalorder %s4343_s15, %s4735_s18 }
  0x8f   : > { %p4346_p3 = pnand %p4345_p0, %p4344_p8  ;;  %p4351_p13 = por %p4350_p10, %p4349_p7 }
  0x91   : > { %p4347_p5 = pneg %p4346_p3  ;;  %p4353_p12 = por %p4352_p9, %p4351_p13 }
  0x93   : > { %p4354_p2 = pnand %p4353_p12, %p4347_p5 }
  0x95   : > { %4357 = shalt.err (!%p4354_p2)
}
  0x96   : > { %s4358_s12 = scalar_lea.vmem %s4737_s23, 1024  ;;  %s4487_s25 = smov [#allocation2]  }
  0x97   : > { %p4359_p4 = scmp.ne.s32.totalorder %s4737_s23, %s4358_s12  ;;  %s4363_s20 = sshll.u32 %s4487_s25, 4  ;;  %s4364_s20 = int_to_ptr.vmem [resolvable:$false] %s4363_s20 }
  0x98   : > { %s4365_s5 = scalar_lea.vmem %s4364_s20, 2048  ;;  %p4366_p3 = scmp.lt.s32.totalorder %s4737_s23, %s4364_s20 }
  0x99   : > { %p4361_p6 = pnand %p4359_p4, %p4345_p0  ;;  %p4367_p7 = scmp.lt.s32.totalorder %s4365_s5, %s4358_s12 }
  0x9b   : > { %p4362_p8 = pneg %p4361_p6  ;;  %p4368_p10 = por %p4367_p7, %p4366_p3 }
  0x9d   : > { %p4369_p13 = pnand %p4368_p10, %p4362_p8 }
  0x9f   : > { %4372 = shalt.err (!%p4369_p13)
}
  0xa0   : > { %s4488_s15 = smov 128   ;;  %s4489_s21 = smov 8  }
  0xa1   : > { %4022 = dma.hbm_to_vmem [thread:$0]  (!%p4739_p11), %s4735_s18, 1024, %s4737_s23, %s4743_s13, %s4488_s15, %s4488_s15, %s4489_s21  }
  0xa2   : > { %p5623_p0 = scmp.ne.s32.totalorder %s5614_s16, 0 }
  0xa3   : > { %s4774_s22 = sand.u32 (!%p5623_p0), 1, %s4471_s26   ;;  %p5624_p5 = scmp.ne.s32.totalorder (!%p5623_p0), %s5611_s14, 0 }
  0xa4   : > { %463 = sbr.rel (%p5623_p0) target bundleno = 2460 (0x99c), region = 68  ;;  %s3529_s17 = sshll.u32 (!%p5623_p0), %s4774_s22, 6 }
  0xa5   : > { %s466_s24 = scalar_lea.sflag (!%p5623_p0), [#allocation3], %s4774_s22  ;;  %s4778_s12 = scalar_lea.vmem (!%p5623_p0), [#allocation2], %s3529_s17 }
  0xab   : > { %4446 = dma.done.wait (%p5624_p5), %s466_s24, 1024  }
  0xac   : > { %4448 = vsyncadd (%p5624_p5), %s466_s24, 4294966272  ;;  %p5625_p11 = scmp.eq.s32.totalorder %s4586_s29, 0 }
  0xae   : > { %4450 = dma.done.wait (%p5625_p11), [#allocation6], 272   ;;  %p5626_p9 = pmov %p5625_p11 }
  0xb0   : > { %4452 = vsyncadd (%p5626_p9), [#allocation6], 4294967024  ;;  %p5627_p12 = pmov %p5626_p9 }
  0xb1   : > { %p5628_p2 = pmov %p5626_p9 }
  0xb2   : > { %4454 = dma.done.wait (%p5627_p12), [#allocation9], 32  }
  0xb3   : > { %4456 = vsyncadd (%p5628_p2), [#allocation9], 4294967264  ;;  %v4123_v0 = vld [vmem:[#allocation7] sm:$0xff]   ;;  %v4124_v1 = vld [vmem:[#allocation7 + $0x8] sm:$0xff]   ;;  %vm669_vm0 = vcmask 261120   ;;  %v4490_v16 = vmov 0.0   ;;  %v562_v54 = vlaneseq }
  0xb4   : > { %3740 = vmatprep.subr.bf16.mxu1 %v4123_v0  ;;  %v4125_v2 = vld [vmem:[%s5585_s2] sm:$0xff]   ;;  %v547_v4 = vld [vmem:[%s4778_s12 + $0x8] sm:$0xff]  ;;  %v548_v5 = vld [vmem:[%s4778_s12 + $0x10] sm:$0xff]  ;;  %vm4491_vm1 = vmmov 0   ;;  %vm931_vm2 = vcmask 130048   ;;  %s3536_s11 = sshll.u32 %s4586_s29, 3 }
  0xb5   : > { %3741 = vmatpush3.bf16.msra.mxu1 %v4123_v0  ;;  %v546_v3 = vld [vmem:[%s4778_s12] sm:$0xff]  ;;  %3728 = vmatprep.subr.bf16.mxu0 %v4125_v2  ;;  %v549_v7 = vld [vmem:[%s4778_s12 + $0x18] sm:$0xff]  ;;  %v4126_v8 = vld [vmem:[%s5585_s2 + $0x8] sm:$0xff]   ;;  %p4836_p4 = scmp.lt.s32.totalorder %s3536_s11, 15  ;;  %s4492_s25 = smov 112   ;;  %vm1700_vm5 = vcmask 64512  }
  0xb6   : > { %3742 = vmatprep.subr.bf16.mxu1 %v4124_v1  ;;  %v642_v6 = vpack.c.bf16 %v547_v4, %v546_v3  ;;  %3729 = vmatpush3.bf16.msra.mxu0 %v4125_v2  ;;  %v550_v9 = vld [vmem:[%s4778_s12 + $0x20] sm:$0xff]  ;;  %v551_v10 = vld [vmem:[%s4778_s12 + $0x28] sm:$0xff]  ;;  %v643_v11 = vpack.c.bf16 %v549_v7, %v548_v5  ;;  %v552_v13 = vld [vmem:[%s4778_s12 + $0x30] sm:$0xff]  ;;  %v4880_v4 = vshrl.u32 %v562_v54, 7  ;;  %vm1991_vm12 = vcmask 1043456   ;;  %s3621_s13 = sshll.u32 %s4586_s29, 7 }
  0xb7   : > { %3730 = vmatprep.subr.bf16.mxu0 %v4126_v8  ;;  %v644_v12 = vpack.c.bf16 %v551_v10, %v550_v9  ;;  %v553_v14 = vld [vmem:[%s4778_s12 + $0x38] sm:$0xff]  ;;  %v3545_v17 = vld [vmem:[#allocation8] ss:$0 sm:$0xff]  ;;  %v4820_v19 = vld [vmem:[#allocation5] ss:$0 sm:$0xff]  ;;  %s5644_s11 = smov (!%p4836_p4, %s3536_s11), 15 }
  0xb8   : > { %3744 = vmatprep.mubr.msk.bf16.mxu1 %vm669_vm0, %v642_v6  ;;  %3732 = vmatprep.mubr.msk.bf16.mxu0 %vm669_vm0, %v642_v6  ;;  %v645_v15 = vpack.c.bf16 %v553_v14, %v552_v13  ;;  %s3537_s20 = sshll.u32 %s5644_s11, 1  ;;  %v564_v9 = vsub.s32 0, %v4880_v4  ;;  %s5632_s5 = sld [smem:[#allocation26_spill]] }
  0xb9   : > { %3743 = vmatpush3.bf16.msra.mxu1 %v4124_v1  ;;  %s4890_s21 = scalar_lea.vmem %s5584_s1, %s3537_s20  ;;  %s3340_s17 = scalar_lea.sflag [#allocation13], %s4774_s22 }
  0xba   : > { %3731 = vmatpush3.bf16.msra.mxu0 %v4126_v8  ;;  %3758 = vmatprep.subr.bf16.mxu1 %v4490_v16  ;;  %s4493_s16 = smov [#allocation12]  }
  0xbb   : > { %3752 = vmatprep.subr.bf16.mxu0 %v4490_v16  ;;  %s4377_s18 = sshll.u32 %s4493_s16, 4  ;;  %s4378_s18 = int_to_ptr.vmem [resolvable:$false] %s4377_s18 }
  0xbc   : > { %3745 = vmatmul.mubr.msk.bf16.vlgmr.msra.gmra.mrb[0].mxu1 %vm669_vm0, %v643_v11  ;;  %s4379_s23 = scalar_lea.vmem %s4378_s18, 256 }
  0xbd   : > { %3748 = vmatprep.mubr.msk.bf16.mxu1 %vm669_vm0, %v644_v12  ;;  %3733 = vmatmul.mubr.msk.bf16.vlgmr.msra.gmra.mrb[0].mxu0 %vm669_vm0, %v643_v11 }
  0xbe   : > { %3736 = vmatprep.mubr.msk.bf16.mxu0 %vm669_vm0, %v644_v12  ;;  %v554_v12 = vld [vmem:[%s4890_s21] sm:$0x3]  ;;  %s5509_s15 = scalar_lea.hbm %s5632_s5, %s3621_s13 }
  0xc4   : > { %3749 = vmatmul.mubr.msk.bf16.gmra.mrb[4].mxu1 %vm669_vm0, %v645_v15 }
  0xc5   : > { %3737 = vmatmul.mubr.msk.bf16.gmra.mrb[4].mxu0 %vm669_vm0, %v645_v15  ;;  %3760 = vmatprep.mubr.msk.bf16.mxu1 %vm4491_vm1, %v4490_v16  ;;  %v4907_v15 = vrot.slane %v554_v12, %v564_v9 }
  0xc6   : > { %3754 = vmatprep.mubr.msk.bf16.mxu0 %vm4491_vm1, %v4490_v16 }
 0x18f   : > { %v3746_v18 = vpop.f32.mrb[0].mxu1 }
 0x190   : > { %v804_v20 = vpop.f32.mrb[1].mxu1  ;;  %v3734_v23 = vpop.f32.mrb[0].mxu0  ;;  %v813_v24 = vadd.f32 %v3746_v18, %v3545_v17 }
 0x191   : > { %v805_v21 = vadd.f32 %v3545_v17, %v804_v20  ;;  %v3747_v22 = vpop.f32.mrb[2].mxu1  ;;  %v4825_v27 = vadd.f32 %v3734_v23, %v4820_v19  ;;  %v716_v28 = vpop.f32.mrb[1].mxu0  ;;  %v557_v23 = vld [vmem:[%s4890_s21 + $0x6] sm:$0x3] }
 0x192   : > { %v4822_v25 = vadd.f32 %v3747_v22, %v3545_v17  ;;  %v807_v26 = vpop.f32.mrb[3].mxu1  ;;  %v3735_v31 = vpop.f32.mrb[2].mxu0  ;;  %v717_v32 = vadd.f32 %v4820_v19, %v716_v28  ;;  %v917_v46 = vpack.c.bf16 %v813_v24, %v813_v24 }
 0x193   : > { %v915_v29 = vpack.c.bf16 %v805_v21, %v805_v21  ;;  %v808_v30 = vadd.f32 %v3545_v17, %v807_v26  ;;  %v4831_v34 = vadd.f32 %v3735_v31, %v4820_v19  ;;  %v719_v35 = vpop.f32.mrb[3].mxu0  ;;  %v869_v10 = vpack.c.bf16 %v4825_v27, %v4825_v27 }
 0x194   : > { %v4093_v33 = vpack.i.bf16 %v4822_v25, %v813_v24  ;;  %v720_v40 = vadd.f32 %v4820_v19, %v719_v35  ;;  %v867_v47 = vpack.c.bf16 %v717_v32, %v717_v32  ;;  %v918_v55 = vpack.c.bf16 %v4822_v25, %v4822_v25  ;;  %v561_v35 = vld [vmem:[%s4890_s21 + $0xe] sm:$0x3] }
 0x195   : > { %v916_v36 = vpack.c.bf16 %v808_v30, %v808_v30  ;;  %v936_v37 = vsel %vm931_vm2, %v915_v29, 0  ;;  %v4083_v38 = vpack.i.bf16 %v808_v30, %v805_v21  ;;  %v4098_v39 = vpack.i.bf16 %v4831_v34, %v4825_v27  ;;  %v558_v27 = vld [vmem:[%s4890_s21 + $0x8] sm:$0x3]  ;;  %v559_v30 = vld [vmem:[%s4890_s21 + $0xa] sm:$0x3] }
 0x196   : > { %4094 = vrot.lane.b32.xlu1 %v4093_v33, %s4492_s25  ;;  %3753 = vmatpush3.bf16.xpose.msra.mxu0 %v936_v37  ;;  %v4088_v43 = vpack.i.bf16 %v720_v40, %v717_v32  ;;  %v868_v62 = vpack.c.bf16 %v720_v40, %v720_v40  ;;  %v1028_v63 = vsel %vm931_vm2, %v917_v46, 0  ;;  %v1074_v6 = vsel %vm931_vm2, %v918_v55, 0  ;;  %v560_v32 = vld [vmem:[%s4890_s21 + $0xc] sm:$0x3] }
 0x197   : > { %4084 = vrot.lane.b32.xlu0 %v4083_v38, %s4492_s25  ;;  %v982_v41 = vsel %vm931_vm2, %v916_v36, 0  ;;  %3764 = vmatprep.subr.bf16.mxu0 %v4490_v16  ;;  %v3750_v42 = vpop.f32.mrb[4].mxu1  ;;  %v870_v13 = vpack.c.bf16 %v4831_v34, %v4831_v34  ;;  %v4932_v29 = vrot.slane %v557_v23, %v564_v9  ;;  %v4939_v31 = vrot.slane %v558_v27, %v564_v9 }
 0x198   : > { %3759 = vmatpush3.bf16.xpose.msra.mxu1 %v982_v41  ;;  %v4847_v44 = vadd.f32 %v3750_v42, %v3545_v17  ;;  %v820_v45 = vpop.f32.mrb[5].mxu1  ;;  %v3738_v49 = vpop.f32.mrb[4].mxu0  ;;  %v4948_v34 = vrot.slane %v559_v30, %v564_v9  ;;  %v4955_v37 = vrot.slane %v560_v32, %v564_v9  ;;  %v4959_v38 = vrot.slane %v561_v35, %v564_v9 }
 0x199   : > { %3770 = vmatprep.subr.bf16.mxu1 %v4490_v16  ;;  %v3751_v48 = vpop.f32.mrb[6].mxu1  ;;  %v4860_v52 = vadd.f32 %v3738_v49, %v4820_v19  ;;  %v732_v53 = vpop.f32.mrb[5].mxu0  ;;  %v821_v56 = vadd.f32 %v3545_v17, %v820_v45 }
 0x19a   : > { %4099 = vrot.lane.b32.xlu1 %v4098_v39, %s4492_s25  ;;  %v4857_v50 = vadd.f32 %v3751_v48, %v3545_v17  ;;  %v823_v51 = vpop.f32.mrb[7].mxu1  ;;  %v3739_v58 = vpop.f32.mrb[6].mxu0  ;;  %v733_v1 = vadd.f32 %v4820_v19, %v732_v53  ;;  %v921_v18 = vpack.c.bf16 %v4847_v44, %v4847_v44 }
 0x19b   : > { %4089 = vrot.lane.b32.xlu0 %v4088_v43, %s4492_s25  ;;  %v824_v57 = vadd.f32 %v3545_v17, %v823_v51  ;;  %v4868_v60 = vadd.f32 %v3739_v58, %v4820_v19  ;;  %v735_v61 = vpop.f32.mrb[7].mxu0  ;;  %v919_v5 = vpack.c.bf16 %v821_v56, %v821_v56  ;;  %v555_v17 = vld [vmem:[%s4890_s21 + $0x2] sm:$0x3]  ;;  %v873_v33 = vpack.c.bf16 %v4860_v52, %v4860_v52 }
 0x19c   : > { %v4113_v59 = vpack.i.bf16 %v4857_v50, %v4847_v44  ;;  %v736_v3 = vadd.f32 %v4820_v19, %v735_v61  ;;  %v556_v19 = vld [vmem:[%s4890_s21 + $0x4] sm:$0x3]  ;;  %v922_v20 = vpack.c.bf16 %v4857_v50, %v4857_v50  ;;  %v871_v21 = vpack.c.bf16 %v733_v1, %v733_v1 }
 0x19d   : > { %3755 = vmatmul.mubr.msk.bf16.vlgmr.msra.gmra.mrb[8].mxu0 %vm931_vm2, %v867_v47  ;;  %v4103_v0 = vpack.i.bf16 %v824_v57, %v821_v56  ;;  %v4118_v2 = vpack.i.bf16 %v4868_v60, %v4860_v52  ;;  %v920_v8 = vpack.c.bf16 %v824_v57, %v824_v57  ;;  %v1120_v11 = vsel %vm931_vm2, %v919_v5, 0 }
 0x19e   : > { %3765 = vmatpush3.bf16.xpose.msra.mxu0 %v1028_v63  ;;  %3766 = vmatprep.mubr.msk.bf16.mxu0 %vm4491_vm1, %v4490_v16  ;;  %v4108_v7 = vpack.i.bf16 %v736_v3, %v733_v1  ;;  %v4921_v22 = vrot.slane %v555_v17, %v564_v9  ;;  %v872_v24 = vpack.c.bf16 %v736_v3, %v736_v3  ;;  %v1212_v25 = vsel %vm931_vm2, %v921_v18, 0 }
 0x19f   : > { %3761 = vmatmul.mubr.msk.bf16.vlgmr.msra.gmra.mrb[8].mxu1 %vm931_vm2, %v868_v62  ;;  %3776 = vmatprep.subr.bf16.mxu0 %v4490_v16  ;;  %v1166_v14 = vsel %vm931_vm2, %v920_v8, 0  ;;  %v4926_v26 = vrot.slane %v556_v19, %v564_v9  ;;  %v1258_v28 = vsel %vm931_vm2, %v922_v20, 0  ;;  %v874_v36 = vpack.c.bf16 %v4868_v60, %v4868_v60 }
 0x1a0   : > { %3771 = vmatpush3.bf16.xpose.msra.mxu1 %v1074_v6  ;;  %3772 = vmatprep.mubr.msk.bf16.mxu1 %vm4491_vm1, %v4490_v16 }
 0x1a1   : > { %3782 = vmatprep.subr.bf16.mxu1 %v4490_v16  ;;  %4104 = vrot.lane.b32.xlu0 %v4103_v0, %s4492_s25 }
 0x1a2   : > { %4109 = vrot.lane.b32.xlu1 %v4108_v7, %s4492_s25 }
 0x1a5   : > { %3767 = vmatmul.mubr.msk.bf16.vlgmr.msra.gmra.mrb[12].mxu0 %vm931_vm2, %v869_v10  ;;  %4114 = vrot.lane.b32.xlu0 %v4113_v59, %s4492_s25 }
 0x1a6   : > { %3777 = vmatpush3.bf16.xpose.msra.mxu0 %v1120_v11  ;;  %3778 = vmatprep.mubr.msk.bf16.mxu0 %vm4491_vm1, %v4490_v16 }
 0x1a7   : > { %3773 = vmatmul.mubr.msk.bf16.vlgmr.msra.gmra.mrb[12].mxu1 %vm931_vm2, %v870_v13  ;;  %3788 = vmatprep.subr.bf16.mxu0 %v4490_v16 }
 0x1a8   : > { %3783 = vmatpush3.bf16.xpose.msra.mxu1 %v1166_v14  ;;  %3784 = vmatprep.mubr.msk.bf16.mxu1 %vm4491_vm1, %v4490_v16 }
 0x1a9   : > { %3794 = vmatprep.subr.bf16.mxu1 %v4490_v16  ;;  %4119 = vrot.lane.b32.xlu1 %v4118_v2, %s4492_s25 }
 0x1aa   : > { %567 = vbcast.lane.b32.xlu0 %v4907_v15, 256 }
 0x1ad   : > { %3779 = vmatmul.mubr.msk.bf16.vlgmr.msra.gmra.mrb[16].mxu0 %vm931_vm2, %v871_v21  ;;  %574 = vbcast.lane.b32.xlu1 %v4921_v22, 256 }
 0x1ae   : > { %3789 = vmatpush3.bf16.xpose.msra.mxu0 %v1212_v25  ;;  %3790 = vmatprep.mubr.msk.bf16.mxu0 %vm4491_vm1, %v4490_v16 }
 0x1af   : > { %3785 = vmatmul.mubr.msk.bf16.vlgmr.msra.gmra.mrb[16].mxu1 %vm931_vm2, %v872_v24  ;;  %581 = vbcast.lane.b32.xlu0 %v4926_v26, 256 }
 0x1b0   : > { %3795 = vmatpush3.bf16.xpose.msra.mxu1 %v1258_v28  ;;  %3796 = vmatprep.mubr.msk.bf16.mxu1 %vm4491_vm1, %v4490_v16 }
 0x1b1   : > { %588 = vbcast.lane.b32.xlu1 %v4932_v29, 256  ;;  %3806 = vmatprep.subr.bf16.mxu1 %v4490_v16 }
 0x1b2   : > { %3800 = vmatprep.subr.bf16.mxu0 %v4490_v16 }
 0x1b3   : > { %595 = vbcast.lane.b32.xlu0 %v4939_v31, 256 }
 0x1b5   : > { %3791 = vmatmul.mubr.msk.bf16.vlgmr.msra.gmra.mrb[20].mxu0 %vm931_vm2, %v873_v33  ;;  %602 = vbcast.lane.b32.xlu1 %v4948_v34, 256 }
 0x1b6   : > { %3802 = vmatprep.mubr.msk.bf16.mxu0 %vm4491_vm1, %v4490_v16 }
 0x1b7   : > { %3797 = vmatmul.mubr.msk.bf16.vlgmr.msra.gmra.mrb[20].mxu1 %vm931_vm2, %v874_v36  ;;  %609 = vbcast.lane.b32.xlu0 %v4955_v37, 256 }
 0x1b8   : > { %3808 = vmatprep.mubr.msk.bf16.mxu1 %vm4491_vm1, %v4490_v16 }
 0x1b9   : > { %616 = vbcast.lane.b32.xlu1 %v4959_v38, 256 }
 0x208   : > { %v4095_v42 = vpop.permute.xlu1 %4094 }
 0x209   : > { %v4085_v39 = vpop.permute.xlu0 %4084  ;;  %v4097_v46 = vunpack.i.h.bf16 %v4095_v42  ;;  %v4096_v47 = vunpack.i.l.bf16 %v4095_v42 }
 0x20a   : > { %v4087_v40 = vunpack.i.h.bf16 %v4085_v39  ;;  %v4086_v41 = vunpack.i.l.bf16 %v4085_v39 }
 0x20b   : > { %v926_v52 = vpack.c.bf16 %v4097_v46, %v4097_v46  ;;  %v925_v53 = vpack.c.bf16 %v4096_v47, %v4096_v47 }
 0x20c   : > { %v924_v43 = vpack.c.bf16 %v4087_v40, %v4087_v40  ;;  %v923_v44 = vpack.c.bf16 %v4086_v41, %v4086_v41  ;;  %v4100_v56 = vpop.permute.xlu1 %4099 }
 0x20d   : > { %v4090_v45 = vpop.permute.xlu0 %4089  ;;  %v1396_v61 = vsel %vm931_vm2, %v925_v53, 0  ;;  %v1442_v62 = vsel %vm931_vm2, %v926_v52, 0  ;;  %v4102_v63 = vunpack.i.h.bf16 %v4100_v56  ;;  %v4101_v0 = vunpack.i.l.bf16 %v4100_v56 }
 0x20e   : > { %v1304_v48 = vsel %vm931_vm2, %v923_v44, 0  ;;  %v1350_v49 = vsel %vm931_vm2, %v924_v43, 0  ;;  %v4092_v50 = vunpack.i.h.bf16 %v4090_v45  ;;  %v4091_v51 = vunpack.i.l.bf16 %v4090_v45 }
 0x20f   : > { %3801 = vmatpush3.bf16.xpose.msra.mxu0 %v1304_v48  ;;  %3807 = vmatpush3.bf16.xpose.msra.mxu1 %v1350_v49  ;;  %v878_v5 = vpack.c.bf16 %v4102_v63, %v4102_v63  ;;  %v877_v6 = vpack.c.bf16 %v4101_v0, %v4101_v0 }
 0x210   : > { %3812 = vmatprep.subr.bf16.mxu0 %v4490_v16  ;;  %3818 = vmatprep.subr.bf16.mxu1 %v4490_v16  ;;  %v876_v57 = vpack.c.bf16 %v4092_v50, %v4092_v50  ;;  %v875_v58 = vpack.c.bf16 %v4091_v51, %v4091_v51 }
 0x213   : > { %v4105_v55 = vpop.permute.xlu0 %4104 }
 0x214   : > { %v4107_v59 = vunpack.i.h.bf16 %v4105_v55  ;;  %v4106_v60 = vunpack.i.l.bf16 %v4105_v55  ;;  %v4110_v7 = vpop.permute.xlu1 %4109 }
 0x215   : > { %v4112_v12 = vunpack.i.h.bf16 %v4110_v7  ;;  %v4111_v13 = vunpack.i.l.bf16 %v4110_v7 }
 0x216   : > { %3803 = vmatmul.mubr.msk.bf16.vlgmr.msra.gmra.mrb[24].mxu0 %vm931_vm2, %v875_v58  ;;  %3809 = vmatmul.mubr.msk.bf16.vlgmr.msra.gmra.mrb[24].mxu1 %vm931_vm2, %v876_v57  ;;  %v928_v1 = vpack.c.bf16 %v4107_v59, %v4107_v59  ;;  %v927_v2 = vpack.c.bf16 %v4106_v60, %v4106_v60 }
 0x217   : > { %3813 = vmatpush3.bf16.xpose.msra.mxu0 %v1396_v61  ;;  %3819 = vmatpush3.bf16.xpose.msra.mxu1 %v1442_v62  ;;  %v4115_v3 = vpop.permute.xlu0 %4114  ;;  %v880_v18 = vpack.c.bf16 %v4112_v12, %v4112_v12  ;;  %v879_v19 = vpack.c.bf16 %v4111_v13, %v4111_v13 }
 0x218   : > { %3814 = vmatprep.mubr.msk.bf16.mxu0 %vm4491_vm1, %v4490_v16  ;;  %3820 = vmatprep.mubr.msk.bf16.mxu1 %vm4491_vm1, %v4490_v16  ;;  %v1488_v8 = vsel %vm931_vm2, %v927_v2, 0  ;;  %v1534_v9 = vsel %vm931_vm2, %v928_v1, 0  ;;  %v4117_v10 = vunpack.i.h.bf16 %v4115_v3  ;;  %v4116_v11 = vunpack.i.l.bf16 %v4115_v3 }
 0x219   : > { %3824 = vmatprep.subr.bf16.mxu0 %v4490_v16  ;;  %3830 = vmatprep.subr.bf16.mxu1 %v4490_v16 }
 0x21a   : > { %v930_v14 = vpack.c.bf16 %v4117_v10, %v4117_v10  ;;  %v929_v17 = vpack.c.bf16 %v4116_v11, %v4116_v11 }
 0x21b   : > { %v4120_v20 = vpop.permute.xlu1 %4119 }
 0x21c   : > { %v1580_v21 = vsel %vm931_vm2, %v929_v17, 0  ;;  %v1626_v23 = vsel %vm931_vm2, %v930_v14, 0  ;;  %v4122_v24 = vunpack.i.h.bf16 %v4120_v20  ;;  %v4121_v25 = vunpack.i.l.bf16 %v4120_v20  ;;  %v568_v30 = vpop.permute.xlu0 %567 }
 0x21d   : > { %v618_v33 = vmul.f32 %v568_v30, %v4907_v15 }
 0x21e   : > { %3815 = vmatmul.mubr.msk.bf16.vlgmr.msra.gmra.mrb[28].mxu0 %vm931_vm2, %v877_v6  ;;  %3821 = vmatmul.mubr.msk.bf16.vlgmr.msra.gmra.mrb[28].mxu1 %vm931_vm2, %v878_v5  ;;  %v882_v27 = vpack.c.bf16 %v4122_v24, %v4122_v24  ;;  %v881_v28 = vpack.c.bf16 %v4121_v25, %v4121_v25 }
 0x21f   : > { %3825 = vmatpush3.bf16.xpose.msra.mxu0 %v1488_v8  ;;  %3831 = vmatpush3.bf16.xpose.msra.mxu1 %v1534_v9  ;;  %v575_v32 = vpop.permute.xlu1 %574  ;;  %vm626_vm3 = vcmp.eq.f32.partialorder %v618_v33, 0.0 }
 0x220   : > { %3826 = vmatprep.mubr.msk.bf16.mxu0 %vm4491_vm1, %v4490_v16  ;;  %3832 = vmatprep.mubr.msk.bf16.mxu1 %vm4491_vm1, %v4490_v16  ;;  %v619_v35 = vmul.f32 %v575_v32, %v4921_v22  ;;  %v5011_v39 = vsel %vm626_vm3, -1e+09, %v4490_v16 }
 0x221   : > { %3836 = vmatprep.subr.bf16.mxu0 %v4490_v16  ;;  %3842 = vmatprep.subr.bf16.mxu1 %v4490_v16  ;;  %v582_v36 = vpop.permute.xlu0 %581 }
 0x222   : > { %vm627_vm4 = vcmp.eq.f32.partialorder %v619_v35, 0.0  ;;  %v620_v43 = vmul.f32 %v582_v36, %v4926_v26 }
 0x223   : > { %v5015_v44 = vsel %vm627_vm4, -1e+09, %v4490_v16 }
 0x224   : > { %vm628_vm6 = vcmp.eq.f32.partialorder %v620_v43, 0.0 }
 0x225   : > { %v5028_v53 = vsel %vm628_vm6, -1e+09, %v4490_v16  ;;  %v596_v24 = vpop.permute.xlu0 %595  ;;  %vm3178_vm6 = vcmask 1041409  }
 0x226   : > { %3827 = vmatmul.mubr.msk.bf16.vlgmr.msra.gmra.mrb[32].mxu0 %vm931_vm2, %v879_v19  ;;  %3833 = vmatmul.mubr.msk.bf16.vlgmr.msra.gmra.mrb[32].mxu1 %vm931_vm2, %v880_v18  ;;  %v622_v30 = vmul.f32 %v596_v24, %v4939_v31 }
 0x227   : > { %3837 = vmatpush3.bf16.xpose.msra.mxu0 %v1580_v21  ;;  %3843 = vmatpush3.bf16.xpose.msra.mxu1 %v1626_v23  ;;  %v589_v21 = vpop.permute.xlu1 %588 }
 0x228   : > { %3838 = vmatprep.mubr.msk.bf16.mxu0 %vm4491_vm1, %v4490_v16  ;;  %3844 = vmatprep.mubr.msk.bf16.mxu1 %vm4491_vm1, %v4490_v16  ;;  %v621_v23 = vmul.f32 %v589_v21, %v4932_v29  ;;  %vm630_vm8 = vcmp.eq.f32.partialorder %v622_v30, 0.0 }
 0x229   : > { %3848 = vmatprep.subr.bf16.mxu0 %v4490_v16  ;;  %3854 = vmatprep.subr.bf16.mxu1 %v4490_v16 }
 0x22a   : > { %vm629_vm7 = vcmp.eq.f32.partialorder %v621_v23, 0.0 }
 0x22b   : > { %v603_v25 = vpop.permute.xlu1 %602  ;;  %v637_v31 = vsel %vm629_vm7, -1e+09, %v4490_v16  ;;  %vm3180_vm7 = vcmask 1042434  }
 0x22e   : > { %3839 = vmatmul.mubr.msk.bf16.vlgmr.msra.gmra.mrb[36].mxu0 %vm931_vm2, %v881_v28  ;;  %3845 = vmatmul.mubr.msk.bf16.vlgmr.msra.gmra.mrb[36].mxu1 %vm931_vm2, %v882_v27 }
 0x22f   : > { %3850 = vmatprep.mubr.msk.bf16.mxu0 %vm4491_vm1, %v4490_v16  ;;  %3856 = vmatprep.mubr.msk.bf16.mxu1 %vm4491_vm1, %v4490_v16 }
 0x270   : > { %v972_v40 = vpop.f32.mrb[8].mxu0 }
 0x271   : > { %v1668_v41 = vmul.f32 0.25, %v972_v40  ;;  %v3756_v42 = vpop.f32.mrb[9].mxu0 }
 0x272   : > { %v975_v45 = vpop.f32.mrb[10].mxu0  ;;  %v1018_v46 = vpop.f32.mrb[8].mxu1 }
 0x273   : > { %v1669_v15 = vmul.f32 0.25, %v1018_v46  ;;  %v3757_v47 = vpop.f32.mrb[11].mxu0  ;;  %v3762_v22 = vpop.f32.mrb[9].mxu1  ;;  %v5018_v48 = vadd.f32 %v1668_v41, %v5011_v39 }
 0x274   : > { %v1021_v49 = vpop.f32.mrb[10].mxu1  ;;  %v623_v47 = vmul.f32 %v603_v25, %v4948_v34  ;;  %v610_v22 = vpop.permute.xlu0 %609 }
 0x275   : > { %v3763_v50 = vpop.f32.mrb[11].mxu1  ;;  %v1701_v51 = vsel %vm1700_vm5, %v5018_v48, -inf  ;;  %v5023_v26 = vadd.f32 %v1669_v15, %v5015_v44  ;;  %v617_v49 = vpop.permute.xlu1 %616 }
 0x276   : > { %1702 = vmax.xlane.f32.xlu0 %v1701_v51  ;;  %v638_v50 = vsel %vm630_vm8, -1e+09, %v4490_v16  ;;  %vm631_vm9 = vcmp.eq.f32.partialorder %v623_v47, 0.0  ;;  %vm3182_vm8 = vcmask 1043459  }
 0x277   : > { %v1704_v52 = vsel %vm1700_vm5, %v5023_v26, -inf }
 0x278   : > { %1705 = vmax.xlane.f32.xlu1 %v1704_v52  ;;  %v1064_v55 = vpop.f32.mrb[12].mxu0 }
 0x279   : > { %v1670_v56 = vmul.f32 0.25, %v1064_v55  ;;  %v3768_v57 = vpop.f32.mrb[13].mxu0 }
 0x27a   : > { %v1067_v58 = vpop.f32.mrb[14].mxu0  ;;  %v1110_v59 = vpop.f32.mrb[12].mxu1 }
 0x27b   : > { %v3769_v60 = vpop.f32.mrb[15].mxu0  ;;  %v3774_v61 = vpop.f32.mrb[13].mxu1  ;;  %v5031_v62 = vadd.f32 %v1670_v56, %v5028_v53  ;;  %v1671_v46 = vmul.f32 0.25, %v1110_v59 }
 0x27c   : > { %v1113_v63 = vpop.f32.mrb[14].mxu1  ;;  %v624_v61 = vmul.f32 %v610_v22, %v4955_v37  ;;  %v625_v37 = vmul.f32 %v617_v49, %v4959_v38 }
 0x27d   : > { %v3775_v0 = vpop.f32.mrb[15].mxu1  ;;  %v1707_v1 = vsel %vm1700_vm5, %v5031_v62, -inf  ;;  %v5054_v59 = vadd.f32 %v1671_v46, %v637_v31 }
 0x27e   : > { %1708 = vmax.xlane.f32.xlu1 %v1707_v1  ;;  %vm632_vm10 = vcmp.eq.f32.partialorder %v624_v61, 0.0  ;;  %vm633_vm11 = vcmp.eq.f32.partialorder %v625_v37, 0.0 }
 0x27f   : > { %v640_v38 = vsel %vm632_vm10, -1e+09, %v4490_v16 }
 0x280   : > { %v1156_v2 = vpop.f32.mrb[16].mxu0 }
 0x281   : > { %v3780_v3 = vpop.f32.mrb[17].mxu0  ;;  %v1672_v51 = vmul.f32 0.25, %v1156_v2 }
 0x282   : > { %v1159_v5 = vpop.f32.mrb[18].mxu0  ;;  %v1202_v6 = vpop.f32.mrb[16].mxu1 }
 0x283   : > { %v3786_v7 = vpop.f32.mrb[17].mxu1  ;;  %v3781_v8 = vpop.f32.mrb[19].mxu0  ;;  %v1673_v2 = vmul.f32 0.25, %v1202_v6  ;;  %v5060_v3 = vadd.f32 %v1672_v51, %v638_v50  ;;  %v639_v5 = vsel %vm631_vm9, -1e+09, %v4490_v16 }
 0x284   : > { %v1205_v9 = vpop.f32.mrb[18].mxu1  ;;  %v1710_v7 = vsel %vm1700_vm5, %v5054_v59, -inf }
 0x285   : > { %v3787_v10 = vpop.f32.mrb[19].mxu1  ;;  %v1713_v6 = vsel %vm1700_vm5, %v5060_v3, -inf }
 0x288   : > { %v5035_v11 = vpop.f32.mrb[20].mxu0 }
 0x289   : > { %v3792_v12 = vpop.f32.mrb[21].mxu0 }
 0x28a   : > { %v1251_v13 = vpop.f32.mrb[22].mxu0  ;;  %v5037_v14 = vpop.f32.mrb[20].mxu1  ;;  %v5072_v12 = vadd.f32 %v1673_v2, %v639_v5 }
 0x28b   : > { %v3793_v17 = vpop.f32.mrb[23].mxu0  ;;  %v3798_v18 = vpop.f32.mrb[21].mxu1  ;;  %v1674_v13 = vmul.f32 0.25, %v5035_v11  ;;  %v1675_v11 = vmul.f32 0.25, %v5037_v14 }
 0x28c   : > { %v1297_v19 = vpop.f32.mrb[22].mxu1 }
 0x28d   : > { %v3799_v20 = vpop.f32.mrb[23].mxu1 }
 0x2e9   : > { %v1340_v27 = vpop.f32.mrb[24].mxu0  ;;  %v1386_v28 = vpop.f32.mrb[24].mxu1 }
 0x2ea   : > { %v1676_v32 = vmul.f32 0.25, %v1340_v27  ;;  %v1677_v33 = vmul.f32 0.25, %v1386_v28  ;;  %v3804_v35 = vpop.f32.mrb[25].mxu0  ;;  %v3810_v36 = vpop.f32.mrb[25].mxu1 }
 0x2eb   : > { %v1343_v40 = vpop.f32.mrb[26].mxu0  ;;  %v1389_v41 = vpop.f32.mrb[26].mxu1  ;;  %v5088_v36 = vadd.f32 %v1674_v13, %v640_v38 }
 0x2ec   : > { %v3805_v42 = vpop.f32.mrb[27].mxu0  ;;  %v3811_v43 = vpop.f32.mrb[27].mxu1  ;;  %v5042_v45 = vadd.f32 %v1676_v32, %v5011_v39  ;;  %v5047_v15 = vadd.f32 %v1677_v33, %v5015_v44  ;;  %v641_v32 = vsel %vm633_vm11, -1e+09, %v4490_v16  ;;  %v1716_v33 = vsel %vm1700_vm5, %v5072_v12, -inf }
 0x2ed   : > { %v5092_v43 = vadd.f32 %v1675_v11, %v641_v32  ;;  %v1719_v47 = vsel %vm1700_vm5, %v5088_v36, -inf  ;;  %vm3184_vm11 = vcmask 1044484  }
 0x2ee   : > { %v1725_v29 = vsel %vm1700_vm5, %v5042_v45, -inf  ;;  %v1728_v44 = vsel %vm1700_vm5, %v5047_v15, -inf }
 0x2ef   : > { %1726 = vmax.xlane.f32.xlu0 %v1725_v29 }
 0x2f1   : > { %v1432_v39 = vpop.f32.mrb[28].mxu0  ;;  %v1478_v52 = vpop.f32.mrb[28].mxu1 }
 0x2f2   : > { %v1678_v55 = vmul.f32 0.25, %v1432_v39  ;;  %v1679_v56 = vmul.f32 0.25, %v1478_v52  ;;  %v3816_v57 = vpop.f32.mrb[29].mxu0  ;;  %v3822_v58 = vpop.f32.mrb[29].mxu1 }
 0x2f3   : > { %v1481_v60 = vpop.f32.mrb[30].mxu1  ;;  %1729 = vmax.xlane.f32.xlu0 %v1728_v44  ;;  %v1435_v34 = vpop.f32.mrb[30].mxu0  ;;  %v1722_v57 = vsel %vm1700_vm5, %v5092_v43, -inf }
 0x2f4   : > { %v3817_v63 = vpop.f32.mrb[31].mxu0  ;;  %v3823_v0 = vpop.f32.mrb[31].mxu1  ;;  %v5058_v1 = vadd.f32 %v1678_v55, %v5028_v53  ;;  %v5067_v9 = vadd.f32 %v1679_v56, %v637_v31 }
 0x2f6   : > { %v1731_v8 = vsel %vm1700_vm5, %v5058_v1, -inf  ;;  %v1734_v18 = vsel %vm1700_vm5, %v5067_v9, -inf }
 0x2f7   : > { %1711 = vmax.xlane.f32.xlu0 %v1710_v7  ;;  %1732 = vmax.xlane.f32.xlu1 %v1731_v8 }
 0x2f9   : > { %v1524_v53 = vpop.f32.mrb[32].mxu0  ;;  %v1570_v10 = vpop.f32.mrb[32].mxu1 }
 0x2fa   : > { %v1680_v17 = vmul.f32 0.25, %v1524_v53  ;;  %v1681_v19 = vmul.f32 0.25, %v1570_v10  ;;  %v3828_v20 = vpop.f32.mrb[33].mxu0  ;;  %v3834_v21 = vpop.f32.mrb[33].mxu1 }
 0x2fb   : > { %1735 = vmax.xlane.f32.xlu0 %v1734_v18  ;;  %1714 = vmax.xlane.f32.xlu1 %v1713_v6  ;;  %v1573_v23 = vpop.f32.mrb[34].mxu1  ;;  %v1527_v24 = vpop.f32.mrb[34].mxu0 }
 0x2fc   : > { %v5078_v25 = vadd.f32 %v1680_v17, %v638_v50  ;;  %v3829_v27 = vpop.f32.mrb[35].mxu0  ;;  %v3835_v28 = vpop.f32.mrb[35].mxu1  ;;  %v5080_v30 = vadd.f32 %v1681_v19, %v639_v5 }
 0x2fe   : > { %v1737_v35 = vsel %vm1700_vm5, %v5078_v25, -inf  ;;  %v1740_v40 = vsel %vm1700_vm5, %v5080_v30, -inf }
 0x2ff   : > { %1717 = vmax.xlane.f32.xlu0 %v1716_v33  ;;  %1738 = vmax.xlane.f32.xlu1 %v1737_v35 }
 0x301   : > { %v1616_v41 = vpop.f32.mrb[36].mxu0  ;;  %v1662_v42 = vpop.f32.mrb[36].mxu1 }
 0x302   : > { %v1682_v14 = vmul.f32 0.25, %v1616_v41  ;;  %v1683_v46 = vmul.f32 0.25, %v1662_v42  ;;  %v3840_v29 = vpop.f32.mrb[37].mxu0  ;;  %v3846_v31 = vpop.f32.mrb[37].mxu1 }
 0x303   : > { %v1665_v22 = vpop.f32.mrb[38].mxu1  ;;  %v1703_v49 = vpop.xlane.xlu0 %1702  ;;  %1741 = vmax.xlane.f32.xlu0 %v1740_v40  ;;  %1720 = vmax.xlane.f32.xlu1 %v1719_v47 }
 0x304   : > { %v1749_v50 = vsub.f32 %v5018_v48, %v1703_v49  ;;  %v1619_v51 = vpop.f32.mrb[38].mxu0  ;;  %v3847_v39 = vpop.f32.mrb[39].mxu1  ;;  %v5097_v52 = vadd.f32 %v1682_v14, %v640_v38  ;;  %v5104_v34 = vadd.f32 %v1683_v46, %v641_v32 }
 0x305   : > { %v3841_v55 = vpop.f32.mrb[39].mxu0  ;;  %v1706_v56 = vpop.xlane.xlu1 %1705 }
 0x306   : > { %v1765_v58 = vmul.f32 1.442695, %v1749_v50  ;;  %v1750_v44 = vsub.f32 %v5023_v26, %v1706_v56  ;;  %v1743_v60 = vsel %vm1700_vm5, %v5097_v52, -inf  ;;  %v1746_v61 = vsel %vm1700_vm5, %v5104_v34, -inf }
 0x307   : > { %1723 = vmax.xlane.f32.xlu0 %v1722_v57  ;;  %1744 = vmax.xlane.f32.xlu1 %v1743_v60 }
 0x308   : > { %4135 = vpow2.f32 %v1765_v58  ;;  %v1767_v48 = vmul.f32 1.442695, %v1750_v44 }
 0x30a   : > { %4137 = vpow2.f32 %v1767_v48 }
 0x30b   : > { %1747 = vmax.xlane.f32.xlu0 %v1746_v61  ;;  %v1709_v5 = vpop.xlane.xlu1 %1708 }
 0x30c   : > { %v1751_v7 = vsub.f32 %v5031_v62, %v1709_v5 }
 0x30e   : > { %v1769_v53 = vmul.f32 1.442695, %v1751_v7 }
 0x312   : > { %v5108_v63 = vpop.eup %4135 }
 0x313   : > { %v1797_v0 = vsel %vm1700_vm5, %v5108_v63, 0.0 }
 0x314   : > { %v5112_v26 = vpop.eup %4137  ;;  %1798 = vadd.xlane.f32.xlu1 %v1797_v0 }
 0x315   : > { %v1800_v2 = vsel %vm1700_vm5, %v5112_v26, 0.0 }
 0x316   : > { %1801 = vadd.xlane.f32.xlu0 %v1800_v2 }
 0x37c   : > { %v1727_v8 = vpop.xlane.xlu0 %1726 }
 0x37d   : > { %v1757_v37 = vsub.f32 %v5042_v45, %v1727_v8 }
 0x37f   : > { %v1781_v6 = vmul.f32 1.442695, %v1757_v37 }
 0x380   : > { %v1730_v10 = vpop.xlane.xlu0 %1729 }
 0x381   : > { %4139 = vpow2.f32 %v1781_v6  ;;  %v1758_v13 = vsub.f32 %v5047_v15, %v1730_v10 }
 0x382   : > { %4141 = vpow2.f32 %v1769_v53 }
 0x383   : > { %v1783_v17 = vmul.f32 1.442695, %v1758_v13 }
 0x384   : > { %v1712_v18 = vpop.xlane.xlu0 %1711  ;;  %v1733_v19 = vpop.xlane.xlu1 %1732 }
 0x385   : > { %4143 = vpow2.f32 %v1783_v17  ;;  %v1752_v20 = vsub.f32 %v5054_v59, %v1712_v18  ;;  %v1759_v21 = vsub.f32 %v5058_v1, %v1733_v19 }
 0x387   : > { %v1771_v38 = vmul.f32 1.442695, %v1752_v20  ;;  %v1785_v62 = vmul.f32 1.442695, %v1759_v21  ;;  %v4215_v20 = vld [vmem:[%s4778_s12] sm:$0xff] }
 0x388   : > { %v1736_v23 = vpop.xlane.xlu0 %1735  ;;  %v1715_v24 = vpop.xlane.xlu1 %1714  ;;  %v1980_v21 = vpack.c.bf16 %v4215_v20, %v4215_v20 }
 0x389   : > { %4145 = vpow2.f32 %v1771_v38  ;;  %v1760_v45 = vsub.f32 %v5067_v9, %v1736_v23  ;;  %v1753_v27 = vsub.f32 %v5060_v3, %v1715_v24  ;;  %v4216_v38 = vld [vmem:[%s4778_s12 + $0x8] sm:$0xff] }
 0x38a   : > { %4147 = vpow2.f32 %v1785_v62  ;;  %v1981_v62 = vpack.c.bf16 %v4216_v38, %v4216_v38  ;;  %v1993_v23 = vsel %vm1991_vm12, %v1980_v21, 0 }
 0x38b   : > { %v5123_v15 = vpop.eup %4139  ;;  %v1787_v28 = vmul.f32 1.442695, %v1760_v45  ;;  %v1773_v11 = vmul.f32 1.442695, %v1753_v27  ;;  %3849 = vmatpush3.bf16.msra.mxu0 %v1993_v23  ;;  %v4219_v23 = vld [vmem:[%s4778_s12 + $0x20] sm:$0xff] }
 0x38c   : > { %v1718_v32 = vpop.xlane.xlu0 %1717  ;;  %v1739_v33 = vpop.xlane.xlu1 %1738  ;;  %v1821_v59 = vsel %vm1700_vm5, %v5123_v15, 0.0  ;;  %3860 = vmatprep.subr.bf16.mxu0 %v4490_v16  ;;  %v2039_v24 = vsel %vm1991_vm12, %v1981_v62, 0 }
 0x38d   : > { %v5127_v1 = vpop.eup %4141  ;;  %4149 = vpow2.f32 %v1787_v28  ;;  %v1754_v35 = vsub.f32 %v5072_v12, %v1718_v32  ;;  %v1761_v40 = vsub.f32 %v5078_v25, %v1739_v33  ;;  %1822 = vadd.xlane.f32.xlu1 %v1821_v59  ;;  %3855 = vmatpush3.bf16.msra.mxu1 %v2039_v24  ;;  %v1984_v24 = vpack.c.bf16 %v4219_v23, %v4219_v23 }
 0x38e   : > { %4151 = vpow2.f32 %v1773_v11  ;;  %v1803_v29 = vsel %vm1700_vm5, %v5127_v1, 0.0  ;;  %3866 = vmatprep.subr.bf16.mxu1 %v4490_v16 }
 0x38f   : > { %v5131_v3 = vpop.eup %4143  ;;  %v1775_v9 = vmul.f32 1.442695, %v1754_v35  ;;  %v1789_v41 = vmul.f32 1.442695, %v1761_v40 }
 0x390   : > { %v1742_v42 = vpop.xlane.xlu0 %1741  ;;  %v1721_v14 = vpop.xlane.xlu1 %1720  ;;  %v1824_v46 = vsel %vm1700_vm5, %v5131_v3, 0.0 }
 0x391   : > { %4153 = vpow2.f32 %v1775_v9  ;;  %v1762_v31 = vsub.f32 %v5080_v30, %v1742_v42  ;;  %v1755_v12 = vsub.f32 %v5088_v36, %v1721_v14  ;;  %1825 = vadd.xlane.f32.xlu0 %v1824_v46  ;;  %1804 = vadd.xlane.f32.xlu1 %v1803_v29  ;;  %v1912_v46 = vand.u32 127, %v562_v54 }
 0x392   : > { %4155 = vpow2.f32 %v1789_v41 }
 0x393   : > { %v5139_v25 = vpop.eup %4145  ;;  %v1791_v47 = vmul.f32 1.442695, %v1762_v31  ;;  %v1777_v22 = vmul.f32 1.442695, %v1755_v12  ;;  %vm5199_vm13 = vcmp.eq.s32.totalorder %v4880_v4, %v1912_v46 }
 0x394   : > { %v5141_v49 = vpop.eup %4147  ;;  %v1724_v50 = vpop.xlane.xlu0 %1723  ;;  %v1806_v39 = vsel %vm1700_vm5, %v5139_v25, 0.0 }
 0x395   : > { %v1745_v51 = vpop.xlane.xlu1 %1744  ;;  %4157 = vpow2.f32 %v1791_v47  ;;  %v1756_v55 = vsub.f32 %v5092_v43, %v1724_v50  ;;  %1807 = vadd.xlane.f32.xlu0 %v1806_v39  ;;  %v1827_v36 = vsel %vm1700_vm5, %v5141_v49, 0.0  ;;  %v4128_v39 = vld [vmem:[%s5589_s6 + $0x8] sm:$0xff]  }
 0x396   : > { %v1763_v30 = vsub.f32 %v5097_v52, %v1745_v51  ;;  %4159 = vpow2.f32 %v1777_v22  ;;  %1828 = vadd.xlane.f32.xlu1 %v1827_v36 }
 0x397   : > { %v5149_v56 = vpop.eup %4149  ;;  %v1779_v57 = vmul.f32 1.442695, %v1756_v55 }
 0x398   : > { %v1793_v58 = vmul.f32 1.442695, %v1763_v30  ;;  %v5151_v44 = vpop.eup %4151  ;;  %v1748_v60 = vpop.xlane.xlu0 %1747  ;;  %v1830_v48 = vsel %vm1700_vm5, %v5149_v56, 0.0 }
 0x399   : > { %4161 = vpow2.f32 %v1779_v57  ;;  %v1764_v43 = vsub.f32 %v5104_v34, %v1748_v60  ;;  %1831 = vadd.xlane.f32.xlu0 %v1830_v48  ;;  %v1809_v52 = vsel %vm1700_vm5, %v5151_v44, 0.0 }
 0x39a   : > { %4163 = vpow2.f32 %v1793_v58  ;;  %1810 = vadd.xlane.f32.xlu1 %v1809_v52  ;;  %v4218_v58 = vld [vmem:[%s4778_s12 + $0x18] sm:$0xff] }
 0x39b   : > { %v5158_v61 = vpop.eup %4153  ;;  %v1795_v0 = vmul.f32 1.442695, %v1764_v43  ;;  %v1983_v60 = vpack.c.bf16 %v4218_v58, %v4218_v58 }
 0x39c   : > { %v5160_v2 = vpop.eup %4155  ;;  %v1812_v5 = vsel %vm1700_vm5, %v5158_v61, 0.0 }
 0x39d   : > { %4165 = vpow2.f32 %v1795_v0  ;;  %1813 = vadd.xlane.f32.xlu0 %v1812_v5  ;;  %v1833_v7 = vsel %vm1700_vm5, %v5160_v2, 0.0 }
 0x39e   : > { %1834 = vadd.xlane.f32.xlu1 %v1833_v7 }
 0x39f   : > { %v5166_v34 = vpop.eup %4157 }
 0x3a0   : > { %v5168_v8 = vpop.eup %4159  ;;  %v1836_v37 = vsel %vm1700_vm5, %v5166_v34, 0.0 }
 0x3a1   : > { %1837 = vadd.xlane.f32.xlu0 %v1836_v37  ;;  %v1815_v53 = vsel %vm1700_vm5, %v5168_v8, 0.0  ;;  %v1799_v45 = vpop.xlane.xlu1 %1798 }
 0x3a2   : > { %1816 = vadd.xlane.f32.xlu1 %v1815_v53  ;;  %4167 = vrcp.f32 %v1799_v45 }
 0x3a3   : > { %v5174_v6 = vpop.eup %4161  ;;  %v1802_v27 = vpop.xlane.xlu0 %1801 }
 0x3a4   : > { %v5176_v10 = vpop.eup %4163  ;;  %v1818_v13 = vsel %vm1700_vm5, %v5174_v6, 0.0  ;;  %4169 = vrcp.f32 %v1802_v27 }
 0x3a5   : > { %1819 = vadd.xlane.f32.xlu0 %v1818_v13  ;;  %v1839_v17 = vsel %vm1700_vm5, %v5176_v10, 0.0 }
 0x3a6   : > { %1840 = vadd.xlane.f32.xlu1 %v1839_v17 }
 0x3a7   : > { %v5182_v18 = vpop.eup %4165 }
 0x3a8   : > { %v1842_v19 = vsel %vm1700_vm5, %v5182_v18, 0.0 }
 0x3a9   : > { %1843 = vadd.xlane.f32.xlu0 %v1842_v19 }
 0x3ac   : > { %v4168_v33 = vpop.eup %4167 }
 0x3ad   : > { %v1846_v9 = vmul.f32 %v4168_v33, %v5108_v63 }
 0x3ae   : > { %v4170_v40 = vpop.eup %4169 }
 0x3af   : > { %v1877_v31 = vsel %vm1700_vm5, %v1846_v9, 0.0  ;;  %v1848_v47 = vmul.f32 %v4170_v40, %v5112_v26 }
 0x3b1   : > { %v1880_v57 = vsel %vm1700_vm5, %v1848_v47, 0.0 }
 0x41a   : > { %v1823_v28 = vpop.xlane.xlu1 %1822 }
 0x41b   : > { %4171 = vrcp.f32 %v1823_v28 }
 0x41e   : > { %v1826_v11 = vpop.xlane.xlu0 %1825  ;;  %v1805_v32 = vpop.xlane.xlu1 %1804 }
 0x41f   : > { %4173 = vrcp.f32 %v1826_v11 }
 0x420   : > { %4175 = vrcp.f32 %v1805_v32 }
 0x422   : > { %v1808_v59 = vpop.xlane.xlu0 %1807 }
 0x423   : > { %4177 = vrcp.f32 %v1808_v59  ;;  %v1829_v35 = vpop.xlane.xlu1 %1828 }
 0x424   : > { %4179 = vrcp.f32 %v1829_v35 }
 0x425   : > { %v4172_v41 = vpop.eup %4171 }
 0x426   : > { %v1832_v42 = vpop.xlane.xlu0 %1831  ;;  %v1862_v14 = vmul.f32 %v4172_v41, %v5123_v15  ;;  %v4217_v15 = vld [vmem:[%s4778_s12 + $0x10] sm:$0xff] }
 0x427   : > { %4181 = vrcp.f32 %v1832_v42  ;;  %v1811_v29 = vpop.xlane.xlu1 %1810  ;;  %v1982_v55 = vpack.c.bf16 %v4217_v15, %v4217_v15  ;;  %v4220_v42 = vld [vmem:[%s4778_s12 + $0x28] sm:$0xff] }
 0x428   : > { %4183 = vrcp.f32 %v1811_v29  ;;  %v1878_v12 = vsel %vm1700_vm5, %v1862_v14, 0.0  ;;  %v1985_v14 = vpack.c.bf16 %v4220_v42, %v4220_v42  ;;  %v4127_v42 = vld [vmem:[%s5589_s6] sm:$0xff]  }
 0x429   : > { %v4174_v22 = vpop.eup %4173  ;;  %v1879_v50 = vadd.f32 %v1878_v12, %v1877_v31  ;;  %v2085_v53 = vsel %vm1991_vm12, %v1982_v55, 0  ;;  %v2177_v12 = vsel %vm1991_vm12, %v1984_v24, 0 }
 0x42a   : > { %v4176_v63 = vpop.eup %4175  ;;  %v1814_v51 = vpop.xlane.xlu0 %1813  ;;  %v1864_v54 = vmul.f32 %v4174_v22, %v5131_v3  ;;  %v2223_v55 = vsel %vm1991_vm12, %v1985_v14, 0 }
 0x42b   : > { %4185 = vrcp.f32 %v1814_v51  ;;  %v1835_v30 = vpop.xlane.xlu1 %1834  ;;  %v1901_v36 = vmul.f32 0.5, %v1879_v50  ;;  %v1850_v0 = vmul.f32 %v4176_v63, %v5127_v1  ;;  %v2131_v1 = vsel %vm1991_vm12, %v1983_v60, 0 }
 0x42c   : > { %4187 = vrcp.f32 %v1835_v30  ;;  %v1881_v26 = vsel %vm1700_vm5, %v1864_v54, 0.0 }
 0x42d   : > { %v4178_v48 = vpop.eup %4177  ;;  %v1916_v43 = vsel %vm5199_vm13, 1.0, %v1901_v36  ;;  %v1882_v52 = vadd.f32 %v1881_v26, %v1880_v57  ;;  %v1883_v62 = vsel %vm1700_vm5, %v1850_v0, 0.0 }
 0x42e   : > { %v4180_v3 = vpop.eup %4179  ;;  %v1838_v5 = vpop.xlane.xlu0 %1837  ;;  %v1924_v7 = vsel %vm1700_vm5, %v1916_v43, 0.0  ;;  %v5212_v37 = vpack.c.bf16 %v1916_v43, %v1916_v43  ;;  %v1852_v20 = vmul.f32 %v4178_v48, %v5139_v25  ;;  %v4221_v48 = vld [vmem:[%s4778_s12 + $0x30] sm:$0xff] }
 0x42f   : > { %4189 = vrcp.f32 %v1838_v5  ;;  %v1817_v13 = vpop.xlane.xlu1 %1816  ;;  %1925 = vadd.xlane.f32.xlu1 %v1924_v7  ;;  %v1902_v17 = vmul.f32 0.5, %v1882_v52  ;;  %v1866_v19 = vmul.f32 %v4180_v3, %v5141_v49  ;;  %v1986_v43 = vpack.c.bf16 %v4221_v48, %v4221_v48  ;;  %v4222_v5 = vld [vmem:[%s4778_s12 + $0x38] sm:$0xff]  ;;  %s3534_s12 = sshll.u32 %s4774_s22, 3 }
 0x430   : > { %4191 = vrcp.f32 %v1817_v13  ;;  %3851 = vmatmul.mubr.msk.bf16.vlgmr.msra.gmra.mrb[40].mxu0 %vm1700_vm5, %v5212_v37  ;;  %v1886_v35 = vsel %vm1700_vm5, %v1852_v20, 0.0  ;;  %v1987_v7 = vpack.c.bf16 %v4222_v5, %v4222_v5  ;;  %s537_s14 = scalar_lea.vmem [#allocation12], %s3534_s12 }
 0x431   : > { %v4182_v21 = vpop.eup %4181  ;;  %v1917_v38 = vsel %vm5199_vm13, 1.0, %v1902_v17  ;;  %3861 = vmatpush3.bf16.msra.mxu0 %v2085_v53  ;;  %3862 = vmatprep.mubr.msk.bf16.mxu0 %vm4491_vm1, %v4490_v16  ;;  %v1884_v49 = vsel %vm1700_vm5, %v1866_v19, 0.0 }
 0x432   : > { %v4184_v45 = vpop.eup %4183  ;;  %v1820_v27 = vpop.xlane.xlu0 %1819  ;;  %v1927_v28 = vsel %vm1700_vm5, %v1917_v38, 0.0  ;;  %v5228_v11 = vpack.c.bf16 %v1917_v38, %v1917_v38  ;;  %v1885_v25 = vadd.f32 %v1884_v49, %v1883_v62  ;;  %v1868_v32 = vmul.f32 %v4182_v21, %v5149_v56  ;;  %3872 = vmatprep.subr.bf16.mxu0 %v4490_v16 }
 0x433   : > { %4193 = vrcp.f32 %v1820_v27  ;;  %v1841_v33 = vpop.xlane.xlu1 %1840  ;;  %1928 = vadd.xlane.f32.xlu0 %v1927_v28  ;;  %v1854_v41 = vmul.f32 %v4184_v45, %v5151_v44  ;;  %v2269_v21 = vsel %vm1991_vm12, %v1986_v43, 0  ;;  %v2315_v24 = vsel %vm1991_vm12, %v1987_v7, 0 }
 0x434   : > { %4195 = vrcp.f32 %v1841_v33  ;;  %3857 = vmatmul.mubr.msk.bf16.vlgmr.msra.gmra.mrb[40].mxu1 %vm1700_vm5, %v5228_v11  ;;  %v1903_v59 = vmul.f32 0.5, %v1885_v25  ;;  %v1887_v40 = vsel %vm1700_vm5, %v1868_v32, 0.0 }
 0x435   : > { %v4186_v9 = vpop.eup %4185  ;;  %3867 = vmatpush3.bf16.msra.mxu1 %v2131_v1  ;;  %3868 = vmatprep.mubr.msk.bf16.mxu1 %vm4491_vm1, %v4490_v16  ;;  %v1888_v56 = vadd.f32 %v1887_v40, %v1886_v35  ;;  %v1889_v15 = vsel %vm1700_vm5, %v1854_v41, 0.0 }
 0x436   : > { %v4188_v46 = vpop.eup %4187  ;;  %v1844_v29 = vpop.xlane.xlu0 %1843  ;;  %v1918_v31 = vsel %vm5199_vm13, 1.0, %v1903_v59  ;;  %3878 = vmatprep.subr.bf16.mxu1 %v4490_v16  ;;  %v1856_v63 = vmul.f32 %v4186_v9, %v5158_v61 }
 0x437   : > { %4197 = vrcp.f32 %v1844_v29  ;;  %v1930_v47 = vsel %vm1700_vm5, %v1918_v31, 0.0  ;;  %v5245_v22 = vpack.c.bf16 %v1918_v31, %v1918_v31  ;;  %v1904_v50 = vmul.f32 0.5, %v1888_v56 }
 0x438   : > { %1931 = vadd.xlane.f32.xlu1 %v1930_v47  ;;  %v1870_v44 = vmul.f32 %v4188_v46, %v5160_v2  ;;  %v1892_v58 = vsel %vm1700_vm5, %v1856_v63, 0.0 }
 0x439   : > { %v4190_v51 = vpop.eup %4189  ;;  %3863 = vmatmul.mubr.msk.bf16.vlgmr.msra.gmra.mrb[44].mxu0 %vm1700_vm5, %v5245_v22  ;;  %v1919_v54 = vsel %vm5199_vm13, 1.0, %v1904_v50 }
 0x43a   : > { %v4192_v30 = vpop.eup %4191  ;;  %v1933_v36 = vsel %vm1700_vm5, %v1919_v54, 0.0  ;;  %v5256_v57 = vpack.c.bf16 %v1919_v54, %v1919_v54  ;;  %3873 = vmatpush3.bf16.msra.mxu0 %v2177_v12  ;;  %3874 = vmatprep.mubr.msk.bf16.mxu0 %vm4491_vm1, %v4490_v16  ;;  %v1890_v61 = vsel %vm1700_vm5, %v1870_v44, 0.0  ;;  %v1872_v2 = vmul.f32 %v4190_v51, %v5166_v34 }
 0x43b   : > { %1934 = vadd.xlane.f32.xlu0 %v1933_v36  ;;  %v1891_v26 = vadd.f32 %v1890_v61, %v1889_v15  ;;  %3884 = vmatprep.subr.bf16.mxu0 %v4490_v16  ;;  %v1858_v3 = vmul.f32 %v4192_v30, %v5168_v8 }
 0x43c   : > { %3869 = vmatmul.mubr.msk.bf16.vlgmr.msra.gmra.mrb[44].mxu1 %vm1700_vm5, %v5256_v57  ;;  %v1893_v60 = vsel %vm1700_vm5, %v1872_v2, 0.0 }
 0x43d   : > { %v4194_v52 = vpop.eup %4193  ;;  %v1905_v0 = vmul.f32 0.5, %v1891_v26  ;;  %3879 = vmatpush3.bf16.msra.mxu1 %v2223_v55  ;;  %3880 = vmatprep.mubr.msk.bf16.mxu1 %vm4491_vm1, %v4490_v16  ;;  %v1894_v34 = vadd.f32 %v1893_v60, %v1892_v58  ;;  %v1895_v49 = vsel %vm1700_vm5, %v1858_v3, 0.0 }
 0x43e   : > { %v4196_v53 = vpop.eup %4195  ;;  %3890 = vmatprep.subr.bf16.mxu1 %v4490_v16  ;;  %v1860_v38 = vmul.f32 %v4194_v52, %v5174_v6 }
 0x43f   : > { %v1920_v13 = vsel %vm5199_vm13, 1.0, %v1905_v0  ;;  %v1906_v17 = vmul.f32 0.5, %v1894_v34  ;;  %v1874_v19 = vmul.f32 %v4196_v53, %v5176_v10 }
 0x440   : > { %v1936_v1 = vsel %vm1700_vm5, %v1920_v13, 0.0  ;;  %v5277_v20 = vpack.c.bf16 %v1920_v13, %v1920_v13  ;;  %v1898_v25 = vsel %vm1700_vm5, %v1860_v38, 0.0 }
 0x441   : > { %v4198_v8 = vpop.eup %4197  ;;  %1937 = vadd.xlane.f32.xlu1 %v1936_v1  ;;  %v1921_v62 = vsel %vm5199_vm13, 1.0, %v1906_v17  ;;  %v1896_v23 = vsel %vm1700_vm5, %v1874_v19, 0.0 }
 0x442   : > { %3875 = vmatmul.mubr.msk.bf16.vlgmr.msra.gmra.mrb[48].mxu0 %vm1700_vm5, %v5277_v20  ;;  %v1939_v10 = vsel %vm1700_vm5, %v1921_v62, 0.0  ;;  %v5289_v45 = vpack.c.bf16 %v1921_v62, %v1921_v62  ;;  %v1897_v27 = vadd.f32 %v1896_v23, %v1895_v49  ;;  %v1876_v6 = vmul.f32 %v4198_v8, %v5182_v18 }
 0x443   : > { %1940 = vadd.xlane.f32.xlu0 %v1939_v10  ;;  %3885 = vmatpush3.bf16.msra.mxu0 %v2269_v21 }
 0x444   : > { %3881 = vmatmul.mubr.msk.bf16.vlgmr.msra.gmra.mrb[48].mxu1 %vm1700_vm5, %v5289_v45  ;;  %3886 = vmatprep.mubr.msk.bf16.mxu0 %vm4491_vm1, %v4490_v16  ;;  %v1907_v28 = vmul.f32 0.5, %v1897_v27  ;;  %v1899_v32 = vsel %vm1700_vm5, %v1876_v6, 0.0 }
 0x445   : > { %3891 = vmatpush3.bf16.msra.mxu1 %v2315_v24  ;;  %3892 = vmatprep.mubr.msk.bf16.mxu1 %vm4491_vm1, %v4490_v16  ;;  %v1900_v33 = vadd.f32 %v1899_v32, %v1898_v25  ;;  %v5333_v32 = vld [vmem:[%s5590_s7] ss:$0 sm:$0xff] }
 0x446   : > { %v1922_v18 = vsel %vm5199_vm13, 1.0, %v1907_v28  ;;  %3908 = vmatprep.subr.bf16.mxu1 %v4490_v16  ;;  %3896 = vmatprep.subr.bf16.mxu0 %v4127_v42 }
 0x447   : > { %v1942_v59 = vsel %vm1700_vm5, %v1922_v18, 0.0  ;;  %v5304_v35 = vpack.c.bf16 %v1922_v18, %v1922_v18  ;;  %v1908_v40 = vmul.f32 0.5, %v1900_v33 }
 0x448   : > { %1943 = vadd.xlane.f32.xlu1 %v1942_v59 }
 0x449   : > { %v1923_v9 = vsel %vm5199_vm13, 1.0, %v1908_v40  ;;  %vm3188_vm13 = vcmask 1046534  }
 0x44a   : > { %3887 = vmatmul.mubr.msk.bf16.vlgmr.msra.gmra.mrb[52].mxu0 %vm1700_vm5, %v5304_v35  ;;  %v1945_v56 = vsel %vm1700_vm5, %v1923_v9, 0.0  ;;  %v5311_v41 = vpack.c.bf16 %v1923_v9, %v1923_v9 }
 0x44b   : > { %1946 = vadd.xlane.f32.xlu0 %v1945_v56  ;;  %3897 = vmatpush3.bf16.msra.mxu0 %v4127_v42 }
 0x44c   : > { %3893 = vmatmul.mubr.msk.bf16.vlgmr.msra.gmra.mrb[52].mxu1 %vm1700_vm5, %v5311_v41  ;;  %3898 = vmatprep.subr.bf16.mxu0 %v4128_v39 }
 0x44d   : > { %3910 = vmatprep.mubr.msk.bf16.mxu1 %vm4491_vm1, %v4490_v16 }
 0x44f   : > { %3899 = vmatpush3.bf16.msra.mxu0 %v4128_v39 }
 0x450   : > { %3920 = vmatprep.subr.bf16.mxu0 %v4490_v16 }
 0x4bc   : > { %v1926_v62 = vpop.xlane.xlu1 %1925 }
 0x4bd   : > { %v1948_v10 = vadd.f32 1.0, %v1926_v62 }
 0x4c0   : > { %v1929_v23 = vpop.xlane.xlu0 %1928 }
 0x4c1   : > { %v1949_v27 = vadd.f32 1.0, %v1929_v23 }
 0x4c5   : > { %v1932_v49 = vpop.xlane.xlu1 %1931 }
 0x4c6   : > { %v1950_v24 = vadd.f32 1.0, %v1932_v49 }
 0x4c8   : > { %v1935_v6 = vpop.xlane.xlu0 %1934  ;;  %4199 = vrcp.f32 %v1950_v24 }
 0x4c9   : > { %4201 = vrcp.f32 %v1948_v10  ;;  %v1951_v28 = vadd.f32 1.0, %v1935_v6 }
 0x4ca   : > { %4203 = vrcp.f32 %v1949_v27 }
 0x4cb   : > { %4205 = vrcp.f32 %v1951_v28 }
 0x4ce   : > { %v1938_v25 = vpop.xlane.xlu1 %1937 }
 0x4d2   : > { %v5336_v9 = vpop.eup %4199 }
 0x4d3   : > { %v5339_v39 = vpop.eup %4201 }
 0x4d5   : > { %v1944_v18 = vpop.xlane.xlu1 %1943 }
 0x503   : > { %v2029_v14 = vpop.f32.mrb[40].mxu0 }
 0x504   : > { %v3852_v46 = vpop.f32.mrb[41].mxu0 }
 0x505   : > { %v2032_v29 = vpop.f32.mrb[42].mxu0 }
 0x506   : > { %v3853_v31 = vpop.f32.mrb[43].mxu0  ;;  %v1941_v29 = vpop.xlane.xlu0 %1940 }
 0x507   : > { %v2075_v12 = vpop.f32.mrb[40].mxu1  ;;  %v1954_v31 = vadd.f32 1.0, %v1944_v18 }
 0x508   : > { %v3626_v47 = vpack.c.bf16 %v2075_v12, %v2029_v14  ;;  %v3858_v50 = vpop.f32.mrb[41].mxu1 }
 0x509   : > { %v2078_v44 = vpop.f32.mrb[42].mxu1  ;;  %v5344_v50 = vpop.eup %4203  ;;  %4207 = vrcp.f32 %v1954_v31 }
 0x50a   : > { %v3859_v63 = vpop.f32.mrb[43].mxu1  ;;  %3900 = vmatprep.mubr.msk.bf16.mxu0 %vm669_vm0, %v3626_v47  ;;  %v1952_v44 = vadd.f32 1.0, %v1938_v25 }
 0x50c   : > { %v2121_v51 = vpop.f32.mrb[44].mxu0  ;;  %4209 = vrcp.f32 %v1952_v44  ;;  %v4227_v44 = vld [vmem:[%s4890_s21 + $0x6] sm:$0x3] }
 0x50d   : > { %v3864_v54 = vpop.f32.mrb[45].mxu0 }
 0x50e   : > { %v2124_v15 = vpop.f32.mrb[46].mxu0 }
 0x50f   : > { %v3865_v55 = vpop.f32.mrb[47].mxu0  ;;  %v2167_v30 = vpop.f32.mrb[44].mxu1 }
 0x510   : > { %v3627_v36 = vpack.c.bf16 %v2167_v30, %v2121_v51  ;;  %v3870_v61 = vpop.f32.mrb[45].mxu1  ;;  %v1953_v55 = vadd.f32 1.0, %v1941_v29  ;;  %v4225_v29 = vld [vmem:[%s4890_s21 + $0x4] sm:$0x3] }
 0x511   : > { %v2170_v2 = vpop.f32.mrb[46].mxu1  ;;  %v1947_v61 = vpop.xlane.xlu0 %1946 }
 0x512   : > { %v3871_v26 = vpop.f32.mrb[47].mxu1  ;;  %3901 = vmatmul.mubr.msk.bf16.vlgmr.msra.gmra.mrb[56].mxu0 %vm669_vm0, %v3627_v36  ;;  %v5348_v36 = vpop.eup %4205  ;;  %4211 = vrcp.f32 %v1953_v55  ;;  %v4230_v55 = vld [vmem:[%s4890_s21 + $0xe] sm:$0x3] }
 0x515   : > { %v2213_v58 = vpop.f32.mrb[48].mxu0 }
 0x516   : > { %v3876_v60 = vpop.f32.mrb[49].mxu0 }
 0x517   : > { %v2216_v48 = vpop.f32.mrb[50].mxu0  ;;  %v2259_v43 = vpop.f32.mrb[48].mxu1 }
 0x518   : > { %v3877_v52 = vpop.f32.mrb[51].mxu0  ;;  %v3628_v0 = vpack.c.bf16 %v2259_v43, %v2213_v58  ;;  %v3882_v34 = vpop.f32.mrb[49].mxu1 }
 0x519   : > { %v2262_v3 = vpop.f32.mrb[50].mxu1  ;;  %v1955_v52 = vadd.f32 1.0, %v1947_v61 }
 0x51a   : > { %v3883_v5 = vpop.f32.mrb[51].mxu1  ;;  %3904 = vmatprep.mubr.msk.bf16.mxu0 %vm669_vm0, %v3628_v0 }
 0x51b   : > { %4213 = vrcp.f32 %v1955_v52 }
 0x51d   : > { %v2305_v7 = vpop.f32.mrb[52].mxu0 }
 0x51e   : > { %v3888_v53 = vpop.f32.mrb[53].mxu0 }
 0x51f   : > { %v2308_v13 = vpop.f32.mrb[54].mxu0  ;;  %v2351_v17 = vpop.f32.mrb[52].mxu1 }
 0x520   : > { %v3889_v19 = vpop.f32.mrb[55].mxu0  ;;  %v3629_v1 = vpack.c.bf16 %v2351_v17, %v2305_v7  ;;  %v3894_v21 = vpop.f32.mrb[53].mxu1 }
 0x521   : > { %v2354_v38 = vpop.f32.mrb[54].mxu1  ;;  %v5366_v53 = vpop.eup %4207 }
 0x522   : > { %v3895_v8 = vpop.f32.mrb[55].mxu1  ;;  %3905 = vmatmul.mubr.msk.bf16.gmra.mrb[60].mxu0 %vm669_vm0, %v3629_v1  ;;  %v5369_v17 = vpop.eup %4209 }
 0x523   : > { %3922 = vmatprep.mubr.msk.bf16.mxu0 %vm4491_vm1, %v4490_v16  ;;  %v5374_v8 = vpop.eup %4211 }
 0x525   : > { %v5384_v28 = vpop.eup %4213 }
 0x5e5   : > { %v3902_v33 = vpop.f32.mrb[56].mxu0 }
 0x5e6   : > { %v2463_v59 = vadd.f32 %v3902_v33, %v5333_v32  ;;  %v2454_v40 = vpop.f32.mrb[57].mxu0 }
 0x5e7   : > { %v2455_v56 = vadd.f32 %v5333_v32, %v2454_v40  ;;  %v3903_v42 = vpop.f32.mrb[58].mxu0 }
 0x5e8   : > { %v2487_v14 = vmul.f32 %v5336_v9, %v2463_v59  ;;  %v2457_v46 = vpop.f32.mrb[59].mxu0  ;;  %v2466_v51 = vadd.f32 %v3903_v42, %v5333_v32 }
 0x5e9   : > { %v2485_v12 = vmul.f32 %v5339_v39, %v2455_v56  ;;  %v2458_v47 = vadd.f32 %v5333_v32, %v2457_v46 }
 0x5ea   : > { %v2495_v63 = vmax.f32 %v2487_v14, 0.0  ;;  %v2488_v58 = vmul.f32 %v5348_v36, %v2466_v51  ;;  %v4224_v14 = vld [vmem:[%s4890_s21 + $0x2] sm:$0x3]  ;;  %v4228_v51 = vld [vmem:[%s4890_s21 + $0xc] sm:$0x3] }
 0x5eb   : > { %v2493_v54 = vmax.f32 %v2485_v12, 0.0  ;;  %v2486_v15 = vmul.f32 %v5344_v50, %v2458_v47  ;;  %v4226_v12 = vld [vmem:[%s4890_s21 + $0x8] sm:$0x3] }
 0x5ec   : > { %v2503_v30 = vpack.c.bf16 %v2495_v63, %v2495_v63  ;;  %v2496_v0 = vmax.f32 %v2488_v58, 0.0 }
 0x5ed   : > { %v2501_v2 = vpack.c.bf16 %v2493_v54, %v2493_v54  ;;  %v2494_v26 = vmax.f32 %v2486_v15, 0.0 }
 0x5ee   : > { %v2596_v60 = vsel %vm1991_vm12, %v2503_v30, 0  ;;  %v2504_v5 = vpack.c.bf16 %v2496_v0, %v2496_v0 }
 0x5ef   : > { %v2502_v48 = vpack.c.bf16 %v2494_v26, %v2494_v26  ;;  %3921 = vmatpush3.bf16.msra.mxu0 %v2596_v60  ;;  %v2510_v43 = vsel %vm1991_vm12, %v2501_v2, 0 }
 0x5f0   : > { %3909 = vmatpush3.bf16.msra.mxu1 %v2510_v43  ;;  %3932 = vmatprep.subr.bf16.mxu0 %v4490_v16  ;;  %v2639_v62 = vsel %vm1991_vm12, %v2504_v5, 0 }
 0x5f1   : > { %3914 = vmatprep.subr.bf16.mxu1 %v4490_v16  ;;  %v2553_v34 = vsel %vm1991_vm12, %v2502_v48, 0 }
 0x5f2   : > { %3923 = vmatmul.mubr.msk.bf16.vlgmr.msra.gmra.mrb[64].mxu0 %vm1700_vm5, %v5245_v22 }
 0x5f3   : > { %3911 = vmatmul.mubr.msk.bf16.vlgmr.msra.gmra.mrb[56].mxu1 %vm1700_vm5, %v5212_v37  ;;  %3934 = vmatprep.mubr.msk.bf16.mxu0 %vm4491_vm1, %v4490_v16 }
 0x5f4   : > { %3915 = vmatpush3.bf16.msra.mxu1 %v2553_v34  ;;  %3916 = vmatprep.mubr.msk.bf16.mxu1 %vm4491_vm1, %v4490_v16 }
 0x5f5   : > { %v3906_v3 = vpop.f32.mrb[60].mxu0  ;;  %3926 = vmatprep.subr.bf16.mxu1 %v4490_v16 }
 0x5f6   : > { %v2479_v7 = vadd.f32 %v3906_v3, %v5333_v32  ;;  %v2470_v22 = vpop.f32.mrb[61].mxu0 }
 0x5f7   : > { %v2471_v37 = vadd.f32 %v5333_v32, %v2470_v22  ;;  %v3907_v13 = vpop.f32.mrb[62].mxu0 }
 0x5f8   : > { %v2491_v19 = vmul.f32 %v5366_v53, %v2479_v7  ;;  %v2473_v1 = vpop.f32.mrb[63].mxu0  ;;  %v2482_v24 = vadd.f32 %v3907_v13, %v5333_v32 }
 0x5f9   : > { %v2489_v21 = vmul.f32 %v5369_v17, %v2471_v37  ;;  %v2474_v38 = vadd.f32 %v5333_v32, %v2473_v1 }
 0x5fa   : > { %v2499_v49 = vmax.f32 %v2491_v19, 0.0  ;;  %v2492_v33 = vmul.f32 %v5384_v28, %v2482_v24 }
 0x5fb   : > { %v2497_v23 = vmax.f32 %v2489_v21, 0.0  ;;  %v2490_v10 = vmul.f32 %v5374_v8, %v2474_v38  ;;  %3917 = vmatmul.mubr.msk.bf16.vlgmr.msra.gmra.mrb[60].mxu1 %vm1700_vm5, %v5228_v11 }
 0x5fc   : > { %3927 = vmatpush3.bf16.msra.mxu1 %v2639_v62  ;;  %3928 = vmatprep.mubr.msk.bf16.mxu1 %vm4491_vm1, %v4490_v16  ;;  %v2507_v25 = vpack.c.bf16 %v2499_v49, %v2499_v49  ;;  %v2500_v11 = vmax.f32 %v2492_v33, 0.0 }
 0x5fd   : > { %v2505_v27 = vpack.c.bf16 %v2497_v23, %v2497_v23  ;;  %v2498_v6 = vmax.f32 %v2490_v10, 0.0  ;;  %3938 = vmatprep.subr.bf16.mxu1 %v4490_v16 }
 0x5fe   : > { %v2768_v40 = vsel %vm1991_vm12, %v2507_v25, 0  ;;  %v2508_v56 = vpack.c.bf16 %v2500_v11, %v2500_v11 }
 0x5ff   : > { %v2506_v18 = vpack.c.bf16 %v2498_v6, %v2498_v6  ;;  %v2682_v32 = vsel %vm1991_vm12, %v2505_v27, 0 }
 0x600   : > { %3933 = vmatpush3.bf16.msra.mxu0 %v2682_v32 }
 0x601   : > { %v2725_v59 = vsel %vm1991_vm12, %v2506_v18, 0  ;;  %3944 = vmatprep.subr.bf16.mxu0 %v4490_v16 }
 0x603   : > { %3929 = vmatmul.mubr.msk.bf16.vlgmr.msra.gmra.mrb[64].mxu1 %vm1700_vm5, %v5256_v57  ;;  %3935 = vmatmul.mubr.msk.bf16.vlgmr.msra.gmra.mrb[68].mxu0 %vm1700_vm5, %v5277_v20  ;;  %v2811_v57 = vsel %vm1991_vm12, %v2508_v56, 0  ;;  %v4129_v20 = vld [vmem:[%s5589_s6 + $0x10] sm:$0xff]   ;;  %vm3186_vm12 = vcmask 1045509  }
 0x604   : > { %3939 = vmatpush3.bf16.msra.mxu1 %v2725_v59  ;;  %3945 = vmatpush3.bf16.msra.mxu0 %v2768_v40 }
 0x605   : > { %3940 = vmatprep.mubr.msk.bf16.mxu1 %vm4491_vm1, %v4490_v16  ;;  %3946 = vmatprep.mubr.msk.bf16.mxu0 %vm4491_vm1, %v4490_v16 }
 0x606   : > { %3950 = vmatprep.subr.bf16.mxu1 %v4490_v16  ;;  %3956 = vmatprep.subr.bf16.mxu0 %v4129_v20 }
 0x60b   : > { %3941 = vmatmul.mubr.msk.bf16.vlgmr.msra.gmra.mrb[68].mxu1 %vm1700_vm5, %v5289_v45  ;;  %3947 = vmatmul.mubr.msk.bf16.vlgmr.msra.gmra.mrb[72].mxu0 %vm1700_vm5, %v5304_v35  ;;  %v4130_v45 = vld [vmem:[%s5589_s6 + $0x18] sm:$0xff]   ;;  %v3001_v35 = vsub.s32 1, %v4880_v4  ;;  %v4229_v4 = vld [vmem:[%s4890_s21 + $0xa] sm:$0x3] }
 0x60c   : > { %3951 = vmatpush3.bf16.msra.mxu1 %v2811_v57  ;;  %3952 = vmatprep.mubr.msk.bf16.mxu1 %vm4491_vm1, %v4490_v16 }
 0x60d   : > { %3968 = vmatprep.subr.bf16.mxu1 %v4490_v16  ;;  %3957 = vmatpush3.bf16.msra.mxu0 %v4129_v20  ;;  %v3009_v46 = vrot.slane %v4224_v14, %v3001_v35  ;;  %v3016_v31 = vrot.slane %v4225_v29, %v3001_v35  ;;  %v3030_v47 = vrot.slane %v4226_v12, %v3001_v35  ;;  %v4131_v20 = vld [vmem:[%s5591_s8] sm:$0xff]  }
 0x60e   : > { %3958 = vmatprep.subr.bf16.mxu0 %v4130_v45  ;;  %v3023_v63 = vrot.slane %v4227_v44, %v3001_v35  ;;  %v3044_v54 = vrot.slane %v4228_v51, %v3001_v35  ;;  %v3037_v15 = vrot.slane %v4229_v4, %v3001_v35  ;;  %v3051_v30 = vrot.slane %v4230_v55, %v3001_v35 }
 0x60f   : > { %3011 = vbcast.lane.b32.xlu0 %v3009_v46, 256 }
 0x611   : > { %3959 = vmatpush3.bf16.msra.mxu0 %v4130_v45  ;;  %v4132_v45 = vld [vmem:[%s5591_s8 + $0x8] sm:$0xff]  }
 0x613   : > { %3953 = vmatmul.mubr.msk.bf16.vlgmr.msra.gmra.mrb[72].mxu1 %vm1700_vm5, %v5311_v41  ;;  %v4223_v41 = vld [vmem:[%s4890_s21] sm:$0x3]  ;;  %3032 = vbcast.lane.b32.xlu0 %v3030_v47, 256  ;;  %s3366_s21 = sshll.u32 %s537_s14, 4  ;;  %s3367_s21 = int_to_ptr.vmem [resolvable:$true] %s3366_s21 }
 0x614   : > { %3972 = vmatprep.mubr.msk.bf16.mxu1 %vm4491_vm1, %v4490_v16  ;;  %v3002_v42 = vrot.slane %v4223_v41, %v3001_v35  ;;  %3969 = vmatpush3.bf16.msra.mxu1 %v4131_v20  ;;  %s4373_s24 = scalar_lea.vmem %s3367_s21, 128  ;;  %p4380_p7 = scmp.lt.s32.totalorder %s3367_s21, %s4378_s18 }
 0x615   : > { %3970 = vmatprep.subr.bf16.mxu1 %v4490_v16  ;;  %p4374_p6 = scmp.ne.s32.totalorder %s3367_s21, %s4373_s24  ;;  %p4381_p10 = scmp.lt.s32.totalorder %s4379_s23, %s4373_s24 }
 0x616   : > { %3004 = vbcast.lane.b32.xlu1 %v3002_v42, 256  ;;  %v5442_v42 = vld [vmem:[%s5590_s7 + $0x1] ss:$0 sm:$0xff] }
 0x617   : > { %3046 = vbcast.lane.b32.xlu0 %v3044_v54, 256  ;;  %p4375_p8 = pnand %p4374_p6, %p4722_p1  ;;  %p4382_p13 = por %p4381_p10, %p4380_p7 }
 0x618   : > { %3971 = vmatpush3.bf16.msra.mxu1 %v4132_v45 }
 0x619   : > { %3976 = vmatprep.subr.bf16.mxu1 %v4490_v16  ;;  %p4376_p3 = pneg %p4375_p8 }
 0x61a   : > { %3018 = vbcast.lane.b32.xlu1 %v3016_v31, 256 }
 0x61b   : > { %p4383_p0 = pnand %p4382_p13, %p4376_p3 }
 0x61e   : > { %3025 = vbcast.lane.b32.xlu1 %v3023_v63, 256 }
 0x622   : > { %3039 = vbcast.lane.b32.xlu1 %v3037_v15, 256 }
 0x626   : > { %3053 = vbcast.lane.b32.xlu1 %v3051_v30, 256 }
 0x681   : > { %v3012_v47 = vpop.permute.xlu0 %3011 }
 0x682   : > { %vm3056_vm3 = vcmp.ne.f32.partialorder %v3012_v47, 1.0 }
 0x688   : > { %v3005_v35 = vpop.permute.xlu1 %3004 }
 0x689   : > { %vm3055_vm15 = vcmp.ne.f32.partialorder %v3005_v35, 1.0 }
 0x68c   : > { %v3019_v41 = vpop.permute.xlu1 %3018 }
 0x68d   : > { %vm3057_vm14 = vcmp.ne.f32.partialorder %v3019_v41, 1.0 }
 0x690   : > { %v3026_v54 = vpop.permute.xlu1 %3025 }
 0x691   : > { %vm3058_vm2 = vcmp.ne.f32.partialorder %v3026_v54, 1.0 }
 0x6c5   : > { %v2632_v61 = vpop.f32.mrb[64].mxu0 }
 0x6c6   : > { %v2546_v2 = vpop.f32.mrb[56].mxu1  ;;  %v3924_v26 = vpop.f32.mrb[65].mxu0 }
 0x6c7   : > { %v3912_v58 = vpop.f32.mrb[57].mxu1  ;;  %v2635_v60 = vpop.f32.mrb[66].mxu0 }
 0x6c8   : > { %v2549_v48 = vpop.f32.mrb[58].mxu1  ;;  %v3925_v43 = vpop.f32.mrb[67].mxu0 }
 0x6c9   : > { %v3913_v52 = vpop.f32.mrb[59].mxu1  ;;  %v5452_v26 = vpop.permute.xlu0 %3032 }
 0x6ca   : > { %vm3059_vm4 = vcmp.ne.f32.partialorder %v5452_v26, 1.0 }
 0x6ce   : > { %v2589_v0 = vpop.f32.mrb[60].mxu1 }
 0x6cf   : > { %v3630_v34 = vpack.c.bf16 %v2589_v0, %v2546_v2  ;;  %v3918_v3 = vpop.f32.mrb[61].mxu1 }
 0x6d0   : > { %v2592_v5 = vpop.f32.mrb[62].mxu1 }
 0x6d1   : > { %v3919_v7 = vpop.f32.mrb[63].mxu1  ;;  %3960 = vmatprep.mubr.msk.bf16.mxu0 %vm669_vm0, %v3630_v34 }
 0x6d6   : > { %v2675_v22 = vpop.f32.mrb[64].mxu1  ;;  %v2718_v37 = vpop.f32.mrb[68].mxu0 }
 0x6d7   : > { %v3631_v13 = vpack.c.bf16 %v2675_v22, %v2632_v61  ;;  %v3930_v19 = vpop.f32.mrb[65].mxu1  ;;  %v3936_v1 = vpop.f32.mrb[69].mxu0 }
 0x6d8   : > { %v2678_v21 = vpop.f32.mrb[66].mxu1  ;;  %v2721_v38 = vpop.f32.mrb[70].mxu0 }
 0x6d9   : > { %v3931_v62 = vpop.f32.mrb[67].mxu1  ;;  %v3937_v49 = vpop.f32.mrb[71].mxu0  ;;  %3961 = vmatmul.mubr.msk.bf16.vlgmr.msra.gmra.mrb[76].mxu0 %vm669_vm0, %v3631_v13 }
 0x6da   : > { %v3047_v13 = vpop.permute.xlu0 %3046  ;;  %v3040_v62 = vpop.permute.xlu1 %3039 }
 0x6db   : > { %vm3061_vm5 = vcmp.ne.f32.partialorder %v3047_v13, 1.0  ;;  %vm3060_vm9 = vcmp.ne.f32.partialorder %v3040_v62, 1.0 }
 0x6de   : > { %v2761_v23 = vpop.f32.mrb[68].mxu1  ;;  %v2804_v24 = vpop.f32.mrb[72].mxu0 }
 0x6df   : > { %v3632_v10 = vpack.c.bf16 %v2761_v23, %v2718_v37  ;;  %v3942_v27 = vpop.f32.mrb[69].mxu1  ;;  %v3948_v6 = vpop.f32.mrb[73].mxu0 }
 0x6e0   : > { %v2764_v25 = vpop.f32.mrb[70].mxu1  ;;  %v2807_v33 = vpop.f32.mrb[74].mxu0 }
 0x6e1   : > { %v3943_v18 = vpop.f32.mrb[71].mxu1  ;;  %v3949_v32 = vpop.f32.mrb[75].mxu0  ;;  %3964 = vmatprep.mubr.msk.bf16.mxu0 %vm669_vm0, %v3632_v10 }
 0x6e6   : > { %v2847_v59 = vpop.f32.mrb[72].mxu1 }
 0x6e7   : > { %v3633_v11 = vpack.c.bf16 %v2847_v59, %v2804_v24  ;;  %v3954_v40 = vpop.f32.mrb[73].mxu1 }
 0x6e8   : > { %v2850_v56 = vpop.f32.mrb[74].mxu1 }
 0x6e9   : > { %v3955_v57 = vpop.f32.mrb[75].mxu1  ;;  %3965 = vmatmul.mubr.msk.bf16.gmra.mrb[80].mxu0 %vm669_vm0, %v3633_v11 }
 0x7ac   : > { %v3962_v14 = vpop.f32.mrb[76].mxu0 }
 0x7ad   : > { %v2961_v46 = vadd.f32 %v3962_v14, %v5442_v42  ;;  %v2952_v29 = vpop.f32.mrb[77].mxu0 }
 0x7ae   : > { %v2953_v31 = vadd.f32 %v5442_v42, %v2952_v29  ;;  %v3963_v12 = vpop.f32.mrb[78].mxu0 }
 0x7af   : > { %v2985_v44 = vmul.f32 %v5336_v9, %v2961_v46  ;;  %v2964_v63 = vadd.f32 %v3963_v12, %v5442_v42  ;;  %v2955_v51 = vpop.f32.mrb[79].mxu0 }
 0x7b0   : > { %v2983_v4 = vmul.f32 %v5339_v39, %v2953_v31  ;;  %v2956_v15 = vadd.f32 %v5442_v42, %v2955_v51  ;;  %v3054_v31 = vpop.permute.xlu1 %3053 }
 0x7b1   : > { %v2993_v55 = vmax.f32 %v2985_v44, 0.0  ;;  %v2986_v30 = vmul.f32 %v5348_v36, %v2964_v63  ;;  %vm3062_vm10 = vcmp.ne.f32.partialorder %v3054_v31, 1.0 }
 0x7b2   : > { %v2991_v61 = vmax.f32 %v2983_v4, 0.0  ;;  %v2984_v2 = vmul.f32 %v5344_v50, %v2956_v15 }
 0x7b3   : > { %v2994_v9 = vmax.f32 %v2986_v30, 0.0  ;;  %v3081_v58 = vsel %vm3057_vm14, -10000.0, %v2993_v55  ;;  %vm3190_vm14 = vcmask 1047559  }
 0x7b4   : > { %v3079_v60 = vsel %vm3055_vm15, -10000.0, %v2991_v61  ;;  %v3101_v48 = vsel %vm669_vm0, %v3081_v58, -inf  ;;  %v2992_v39 = vmax.f32 %v2984_v2, 0.0 }
 0x7b5   : > { %v3087_v43 = vsel %vm669_vm0, %v3079_v60, -inf  ;;  %v3102_v52 = vrot.slane %v3101_v48, 4  ;;  %v3082_v0 = vsel %vm3058_vm2, -10000.0, %v2994_v9 }
 0x7b6   : > { %v3088_v34 = vrot.slane %v3087_v43, 4  ;;  %v3108_v36 = vsel %vm669_vm0, %v3082_v0, -inf  ;;  %v3080_v3 = vsel %vm3056_vm3, -10000.0, %v2992_v39 }
 0x7b7   : > { %v3103_v5 = vmax.f32 %v3101_v48, %v3102_v52  ;;  %v3109_v50 = vrot.slane %v3108_v36, 4  ;;  %v3094_v7 = vsel %vm669_vm0, %v3080_v3, -inf }
 0x7b8   : > { %v3089_v22 = vmax.f32 %v3087_v43, %v3088_v34  ;;  %v3095_v37 = vrot.slane %v3094_v7, 4 }
 0x7b9   : > { %v3104_v19 = vrot.slane %v3103_v5, 2  ;;  %v3110_v1 = vmax.f32 %v3108_v36, %v3109_v50 }
 0x7ba   : > { %v3090_v21 = vrot.slane %v3089_v22, 2  ;;  %v3096_v38 = vmax.f32 %v3094_v7, %v3095_v37 }
 0x7bb   : > { %v3105_v49 = vmax.f32 %v3103_v5, %v3104_v19  ;;  %v3111_v23 = vrot.slane %v3110_v1, 2 }
 0x7bc   : > { %v3091_v24 = vmax.f32 %v3089_v22, %v3090_v21  ;;  %v3097_v10 = vrot.slane %v3096_v38, 2  ;;  %v3966_v27 = vpop.f32.mrb[80].mxu0 }
 0x7bd   : > { %v3106_v6 = vrot.slane %v3105_v49, 1  ;;  %v3112_v25 = vmax.f32 %v3110_v1, %v3111_v23  ;;  %v2977_v33 = vadd.f32 %v3966_v27, %v5442_v42  ;;  %v2968_v18 = vpop.f32.mrb[81].mxu0 }
 0x7be   : > { %v3092_v32 = vrot.slane %v3091_v24, 1  ;;  %v3098_v59 = vmax.f32 %v3096_v38, %v3097_v10  ;;  %v2969_v11 = vadd.f32 %v5442_v42, %v2968_v18  ;;  %v3967_v40 = vpop.f32.mrb[82].mxu0 }
 0x7bf   : > { %v3107_v56 = vmax.f32 %v3105_v49, %v3106_v6  ;;  %v3113_v57 = vrot.slane %v3112_v25, 1  ;;  %v2989_v20 = vmul.f32 %v5366_v53, %v2977_v33  ;;  %v2980_v45 = vadd.f32 %v3967_v40, %v5442_v42  ;;  %v2971_v35 = vpop.f32.mrb[83].mxu0 }
 0x7c0   : > { %v3093_v41 = vmax.f32 %v3091_v24, %v3092_v32  ;;  %v3099_v14 = vrot.slane %v3098_v59, 1  ;;  %v2987_v46 = vmul.f32 %v5369_v17, %v2969_v11  ;;  %v2972_v29 = vadd.f32 %v5442_v42, %v2971_v35 }
 0x7c1   : > { %v3145_v12 = vpack.c.bf16 %v3107_v56, %v3107_v56  ;;  %v3114_v47 = vmax.f32 %v3112_v25, %v3113_v57  ;;  %v2990_v44 = vmul.f32 %v5384_v28, %v2980_v45  ;;  %v2997_v63 = vmax.f32 %v2989_v20, 0.0 }
 0x7c2   : > { %v3143_v51 = vpack.c.bf16 %v3093_v41, %v3093_v41  ;;  %v3100_v54 = vmax.f32 %v3098_v59, %v3099_v14  ;;  %v2995_v4 = vmax.f32 %v2987_v46, 0.0  ;;  %v2988_v53 = vmul.f32 %v5374_v8, %v2972_v29 }
 0x7c3   : > { %v3146_v15 = vpack.c.bf16 %v3114_v47, %v3114_v47  ;;  %v3085_v55 = vsel %vm3061_vm5, -10000.0, %v2997_v63  ;;  %v2998_v30 = vmax.f32 %v2990_v44, 0.0  ;;  %v3172_v61 = vunpack.c.l.b16 %v3145_v12 }
 0x7c4   : > { %v3144_v17 = vpack.c.bf16 %v3100_v54, %v3100_v54  ;;  %v3324_v42 = vsel %vm3178_vm6, %v3100_v54, %v3093_v41  ;;  %v3083_v2 = vsel %vm3059_vm4, -10000.0, %v2995_v4  ;;  %v3170_v9 = vunpack.c.l.b16 %v3143_v51 }
 0x7c5   : > { %v3325_v28 = vsel %vm3180_vm7, %v3107_v56, %v3324_v42  ;;  %v3115_v58 = vsel %vm669_vm0, %v3083_v2, -inf  ;;  %v2996_v60 = vmax.f32 %v2988_v53, 0.0  ;;  %v3129_v43 = vsel %vm669_vm0, %v3085_v55, -inf  ;;  %v4134_v55 = vld [vmem:[%s5593_s10 + $0x8] sm:$0xff]  }
 0x7c6   : > { %v3171_v48 = vunpack.c.l.b16 %v3144_v17  ;;  %v3326_v8 = vsel %vm3182_vm8, %v3114_v47, %v3325_v28  ;;  %v3116_v39 = vrot.slane %v3115_v58, 4  ;;  %v3173_v52 = vunpack.c.l.b16 %v3146_v15  ;;  %v4133_v15 = vld [vmem:[%s5593_s10] sm:$0xff]  }
 0x7c7   : > { %v3084_v0 = vsel %vm3060_vm9, -10000.0, %v2996_v60  ;;  %v3130_v34 = vrot.slane %v3129_v43, 4  ;;  %v3086_v36 = vsel %vm3062_vm10, -10000.0, %v2998_v30  ;;  %v3611_v30 = vld [vmem:[#allocation10] ss:$0 sm:$0xff] }
 0x7c8   : > { %v3179_v26 = vsel %vm3178_vm6, %v3171_v48, %v3170_v9  ;;  %v3117_v3 = vmax.f32 %v3115_v58, %v3116_v39  ;;  %v3122_v5 = vsel %vm669_vm0, %v3084_v0, -inf  ;;  %v3136_v50 = vsel %vm669_vm0, %v3086_v36, -inf }
 0x7c9   : > { %v3181_v7 = vsel %vm3180_vm7, %v3172_v61, %v3179_v26  ;;  %v3123_v22 = vrot.slane %v3122_v5, 4  ;;  %v3131_v37 = vmax.f32 %v3129_v43, %v3130_v34  ;;  %v3137_v13 = vrot.slane %v3136_v50, 4 }
 0x7ca   : > { %v3183_v19 = vsel %vm3182_vm8, %v3173_v52, %v3181_v7  ;;  %v3118_v1 = vrot.slane %v3117_v3, 2 }
 0x7cb   : > { %v3124_v21 = vmax.f32 %v3122_v5, %v3123_v22  ;;  %v3132_v38 = vrot.slane %v3131_v37, 2  ;;  %v3138_v62 = vmax.f32 %v3136_v50, %v3137_v13 }
 0x7cc   : > { %v3119_v49 = vmax.f32 %v3117_v3, %v3118_v1 }
 0x7cd   : > { %v3125_v23 = vrot.slane %v3124_v21, 2  ;;  %v3133_v24 = vmax.f32 %v3131_v37, %v3132_v38  ;;  %v3139_v10 = vrot.slane %v3138_v62, 2 }
 0x7ce   : > { %v3120_v27 = vrot.slane %v3119_v49, 1 }
 0x7cf   : > { %v3126_v6 = vmax.f32 %v3124_v21, %v3125_v23  ;;  %v3134_v25 = vrot.slane %v3133_v24, 1  ;;  %v3140_v33 = vmax.f32 %v3138_v62, %v3139_v10 }
 0x7d0   : > { %v3121_v18 = vmax.f32 %v3119_v49, %v3120_v27 }
 0x7d1   : > { %v3127_v32 = vrot.slane %v3126_v6, 1  ;;  %v3135_v59 = vmax.f32 %v3133_v24, %v3134_v25  ;;  %v3141_v11 = vrot.slane %v3140_v33, 1 }
 0x7d2   : > { %v3147_v40 = vpack.c.bf16 %v3121_v18, %v3121_v18  ;;  %v3327_v56 = vsel %vm3184_vm11, %v3121_v18, %v3326_v8 }
 0x7d3   : > { %v3128_v57 = vmax.f32 %v3126_v6, %v3127_v32  ;;  %v3142_v20 = vmax.f32 %v3140_v33, %v3141_v11  ;;  %v3149_v35 = vpack.c.bf16 %v3135_v59, %v3135_v59 }
 0x7d4   : > { %v3174_v45 = vunpack.c.l.b16 %v3147_v40 }
 0x7d5   : > { %v3148_v41 = vpack.c.bf16 %v3128_v57, %v3128_v57  ;;  %v3328_v14 = vsel %vm3186_vm12, %v3128_v57, %v3327_v56  ;;  %v3150_v46 = vpack.c.bf16 %v3142_v20, %v3142_v20  ;;  %v3176_v44 = vunpack.c.l.b16 %v3149_v35 }
 0x7d6   : > { %v3185_v29 = vsel %vm3184_vm11, %v3174_v45, %v3183_v19  ;;  %v3329_v31 = vsel %vm3188_vm13, %v3135_v59, %v3328_v14 }
 0x7d7   : > { %v3175_v12 = vunpack.c.l.b16 %v3148_v41  ;;  %v3330_v47 = vsel %vm3190_vm14, %v3142_v20, %v3329_v31  ;;  %v3177_v51 = vunpack.c.l.b16 %v3150_v46 }
 0x7d8   : > { %3332 = vst.msk [vmem:[%s537_s14] sm:$0xff] %vm669_vm0, %v3330_v47 }
 0x7d9   : > { %v3187_v63 = vsel %vm3186_vm12, %v3175_v12, %v3185_v29 }
 0x7da   : > { %v3189_v54 = vsel %vm3188_vm13, %v3176_v44, %v3187_v63 }
 0x7db   : > { %v3191_v4 = vsel %vm3190_vm14, %v3177_v51, %v3189_v54 }
 0x7dc   : > { %v3192_v53 = vpack.c.b16 %v3191_v4, %v3191_v4 }
 0x7de   : > { %3973 = vmatmul.mubr.msk.bf16.vlgmr.msra.gmra.mrb[76].mxu1 %vm669_vm0, %v3192_v53 }
 0x7df   : > { %3980 = vmatprep.mubr.msk.bf16.mxu1 %vm4491_vm1, %v4490_v16  ;;  %3977 = vmatpush3.bf16.msra.mxu1 %v4133_v15 }
 0x7e0   : > { %3978 = vmatprep.subr.bf16.mxu1 %v4490_v16 }
 0x7e3   : > { %3979 = vmatpush3.bf16.msra.mxu1 %v4134_v55 }
 0x8b1   : > { %v3242_v61 = vpop.f32.mrb[76].mxu1 }
 0x8b2   : > { %v3243_v17 = vadd.f32 %v3611_v30, %v3242_v61  ;;  %v3974_v42 = vpop.f32.mrb[77].mxu1 }
 0x8b3   : > { %v3245_v2 = vpop.f32.mrb[78].mxu1 }
 0x8b4   : > { %v3248_v9 = vmax.f32 %v3243_v17, 0.0  ;;  %v3975_v28 = vpop.f32.mrb[79].mxu1 }
 0x8b6   : > { %v3249_v58 = vpack.c.bf16 %v3248_v9, %v3248_v9 }
 0x8b8   : > { %3981 = vmatmul.mubr.msk.bf16.vlgmr.msra.gmra.mrb[80].mxu1 %vm669_vm0, %v3249_v58 }
 0x8b9   : > { %4386 = shalt.err (!%p4383_p0)
}
 0x8ba   : > { %s4387_s14 = scalar_lea.hbm %s5509_s15, 128  ;;  %s4391_s20 = scalar_lea.hbm %s5632_s5, 256 }
 0x8bb   : > { %p4388_p5 = scmp.ne.s32.totalorder %s5509_s15, %s4387_s14  ;;  %p4392_p12 = scmp.lt.u32.totalorder %s5509_s15, %s5632_s5 }
 0x8bc   : > { %p4393_p2 = scmp.lt.u32.totalorder %s4391_s20, %s4387_s14  ;;  %p4395_p6 = scmp.lt.u32.totalorder %s4387_s14, %s5509_s15 }
 0x8bd   : > { %p4389_p11 = pnand %p4388_p5, %p4722_p1 }
 0x8be   : > { %p4394_p4 = por %p4393_p2, %p4392_p12 }
 0x8bf   : > { %p4390_p9 = pneg %p4389_p11 }
 0x8c0   : > { %p4396_p8 = por %p4395_p6, %p4394_p4 }
 0x8c2   : > { %p4397_p3 = pnand %p4396_p8, %p4390_p9 }
 0x8c4   : > { %4400 = shalt.err (!%p4397_p3)
}
 0x8c5   : > { %4003 = dma.vmem_to_hbm [thread:$0]  (%p4722_p1), %s3367_s21, 128, %s5509_s15, %s3340_s17  }
 0x8c6   : > { %s5633_s11 = sld [smem:[#allocation24_spill]]  ;;  %s530_s25 = scalar_lea.vmem [#allocation11], %s3534_s12 }
 0x8c7   : > { %s3353_s20 = sshll.u32 %s530_s25, 4  ;;  %s5634_s18 = sld [smem:[#allocation25_spill]]  ;;  %s5541_s20 = int_to_ptr.vmem [resolvable:$true] %s3353_s20 }
 0x8c8   : > { %s3335_s15 = scalar_lea.sflag [#allocation4], %s4774_s22  ;;  %s4401_s12 = scalar_lea.vmem %s5541_s20, 128 }
 0x8c9   : > { %p4402_p7 = scmp.ne.s32.totalorder %s5541_s20, %s4401_s12  ;;  %s4494_s29 = smov [#allocation11]  }
 0x8ca   : > { %s4405_s21 = sshll.u32 %s4494_s29, 4  ;;  %s4406_s21 = int_to_ptr.vmem [resolvable:$false] %s4405_s21 }
 0x8cb   : > { %p4403_p10 = pnand %p4402_p7, %p4722_p1  ;;  %s4407_s17 = scalar_lea.vmem %s4406_s21, 256 }
 0x8cc   : > { %v3615_v16 = vld [vmem:[%s5633_s11] ss:$0 sm:$0xff]  ;;  %p4408_p0 = scmp.lt.s32.totalorder %s5541_s20, %s4406_s21  ;;  %p4409_p5 = scmp.lt.s32.totalorder %s4407_s17, %s4401_s12 }
 0x8cd   : > { %s5539_s0 = scalar_lea.hbm %s5634_s18, %s3621_s13  ;;  %p4404_p13 = pneg %p4403_p10 }
 0x8ce   : > { %p4410_p11 = por %p4409_p5, %p4408_p0 }
 0x8d0   : > { %p4411_p9 = pnand %p4410_p11, %p4404_p13 }
 0x98b   : > { %v3310_v60 = vpop.f32.mrb[80].mxu1 }
 0x98c   : > { %v3311_v48 = vadd.f32 %v3615_v16, %v3310_v60  ;;  %v3982_v8 = vpop.f32.mrb[81].mxu1 }
 0x98d   : > { %v3313_v39 = vpop.f32.mrb[82].mxu1 }
 0x98e   : > { %3333 = vst [vmem:[%s530_s25] sm:$0xff] %v3311_v48  ;;  %v3983_v43 = vpop.f32.mrb[83].mxu1 }
 0x98f   : > { %4414 = shalt.err (!%p4411_p9)
}
 0x990   : > { %s4415_s22 = scalar_lea.hbm %s5539_s0, 128  ;;  %s4419_s23 = scalar_lea.hbm %s5634_s18, 256 }
 0x991   : > { %p4416_p12 = scmp.ne.s32.totalorder %s5539_s0, %s4415_s22  ;;  %p4420_p6 = scmp.lt.u32.totalorder %s5539_s0, %s5634_s18 }
 0x992   : > { %p4421_p8 = scmp.lt.u32.totalorder %s4419_s23, %s4415_s22  ;;  %p4423_p7 = scmp.lt.u32.totalorder %s4415_s22, %s5539_s0 }
 0x993   : > { %p4417_p2 = pnand %p4416_p12, %p4722_p1 }
 0x994   : > { %p4422_p3 = por %p4421_p8, %p4420_p6 }
 0x995   : > { %p4418_p4 = pneg %p4417_p2 }
 0x996   : > { %p4424_p10 = por %p4423_p7, %p4422_p3 }
 0x998   : > { %p4425_p13 = pnand %p4424_p10, %p4418_p4 }
 0x99a   : > { %4428 = shalt.err (!%p4425_p13)
}
 0x99b   : > { %4002 = dma.vmem_to_hbm [thread:$0]  (%p4722_p1), %s5541_s20, 128, %s5539_s0, %s3335_s15  }
 0x99c PF: > { %s5635_s14 = sld [smem:[#allocation19_spill]]  ;;  %s5636_s16 = sld [smem:[#allocation20_spill]] }
 0x99d   : > { %p5638_p5 = scmp.ge.s32.totalorder %s4479_s28, 2 }
 0x9a2   : > { %s3378_s12 = sand.u32 1, %s5635_s14   ;;  %p5637_p0 = scmp.ne.s32.totalorder %s5636_s16, 0 }
 0x9a3   : > { %s3379_s29 = scalar_lea.sflag [#allocation4], %s3378_s12 }
 0x9a4   : > { %p4024_p11 = pnand %p5638_p5, %p5637_p0 }
 0x9a6   : > { %4458 = dma.done.wait (!%p4024_p11), %s3379_s29, 128  }
 0x9a7   : > { %4460 = vsyncadd (!%p4024_p11), %s3379_s29, 4294967168  ;;  %s3388_s21 = scalar_lea.sflag [#allocation13], %s3378_s12 }
 0x9a8   : > { %4462 = dma.done.wait (!%p4024_p11), %s3388_s21, 128  }
 0x9a9   : > { %4464 = vsyncadd (!%p4024_p11), %s3388_s21, 4294967168  ;;  %p32_p1 = scmp.ge.s32.totalorder %s4712_s3, 4   ;;  %s5639_s25 = smov %s4471_s26 }
 0x9aa   : > { %s5640_s26 = smov %s4475_s27  ;;  %s5641_s27 = smov %s4728_s30 }
 0x9ab   : > { %s5642_s28 = smov %s4712_s3  ;;  %34 = sbr.rel (!%p32_p1) target bundleno = 16 (0x10), region = 151 }
 0x9b2   :  { %3393 = vsyncpa [#allocation3], 1 }
 0x9b3   :  { %3395 = vsyncpa [#allocation3 + $0x1], 1 }
 0x9b4   :  { %3396 = vsyncpa [#allocation6], 1 }
 0x9b5   :  { %3397 = vsyncpa [#allocation9], 1 }
 0x9b6   :  { %3398 = vsyncpa [#allocation4], 1 }
 0x9b7   :  { %3400 = vsyncpa [#allocation4 + $0x1], 1 }
 0x9b8   :  { %3401 = vsyncpa [#allocation13], 1 }
 0x9b9   :  { %3403 = vsyncpa [#allocation13 + $0x1], 1 }

</bundles_post_ra>
